<compile_context>
chip_gen: v6e
topology: v6e:2x2x1
jax: 0.10.0
libtpu: 0.0.40
codegen_flags: <defaults>
</compile_context>

<pallas_src>
import functools
import math

import jax
import jax.numpy as jnp
from jax import lax
from jax.experimental import pallas as pl
from jax.experimental.pallas import tpu as pltpu


NUM_HEADS = 8


# ----------------------------- Fused MHA kernel -----------------------------
def _mha_fused_kernel(xk_ref, xv_ref, xq_ref, m_ref,
                      wk_ref, bk_ref, wv_ref, bv_ref,
                      wq_ref, bq_ref, wo_ref, bo_ref,
                      o_ref, *, num_heads, head_dim):
    # Weight slabs (constant index_map -> resident in VMEM across grid steps).
    wk = wk_ref[...]          # [E, E]   (already transposed: in x out)
    wv = wv_ref[...]          # [E, E]
    wq = wq_ref[...]          # [E, E]   (scale already folded in)
    wo = wo_ref[...]          # [E, E]
    bk = bk_ref[...]          # [1, E]
    bv = bv_ref[...]          # [1, E]
    bq = bq_ref[...]          # [1, E]   (scale already folded in)
    bo = bo_ref[...]          # [1, E]

    neg_big = jnp.float32(-1e9)
    nb = xq_ref.shape[0]      # batch elements handled by this grid step

    for b in range(nb):                                   # static (small) unroll
        xk_b = xk_ref[b]                                   # [Sk, E]
        xv_b = xv_ref[b]                                   # [Sk, E]
        xq_b = xq_ref[b]                                   # [Sq, E]
        m_b = m_ref[b]                                     # [Sq, Sk]

        # Three full-width projections (one MXU matmul each, lane-dense results).
        q_all = jnp.dot(xq_b, wq, preferred_element_type=jnp.float32) + bq   # [Sq, E]
        k_all = jnp.dot(xk_b, wk, preferred_element_type=jnp.float32) + bk   # [Sk, E]
        v_all = jnp.dot(xv_b, wv, preferred_element_type=jnp.float32) + bv   # [Sk, E]

        # Head-invariant additive mask, computed once per batch element.
        mask_add = jnp.where(m_b == 0, neg_big, jnp.float32(0.0))            # [Sq, Sk]

        ctx_parts = []
        for h in range(num_heads):                         # static unroll, H=8
            lo = h * head_dim
            q_h = q_all[:, lo:lo + head_dim]               # [Sq, d]
            k_h = k_all[:, lo:lo + head_dim]               # [Sk, d]
            v_h = v_all[:, lo:lo + head_dim]               # [Sk, d]

            # scores = (q * scale) @ k^T  (scale pre-folded into wq/bq)
            s = lax.dot_general(q_h, k_h, (((1,), (1,)), ((), ())),
                                preferred_element_type=jnp.float32)           # [Sq, Sk]
            s = s + mask_add
            s = s - jnp.max(s, axis=-1, keepdims=True)
            e = jnp.exp(s)
            p = e * pl.reciprocal(jnp.sum(e, axis=-1, keepdims=True), approx=True)

            ctx_parts.append(
                jnp.dot(p, v_h, preferred_element_type=jnp.float32))          # [Sq, d]

        # "concat heads" -> single output projection (one E-wide contraction).
        ctx = jnp.concatenate(ctx_parts, axis=-1)                             # [Sq, E]
        o_ref[b] = jnp.dot(ctx, wo, preferred_element_type=jnp.float32) + bo  # [Sq, E]


def _batch_per_grid_step(batch):
    """v7x has 2 TensorCores/chip -> keep a per-batch grid so the 'parallel'
    axis can be split across cores.  Single-TC chips (v5e/v6e): fold the whole
    batch into one grid step to kill per-step overhead."""
    try:
        kind = jax.devices()[0].device_kind.lower()
    except Exception:
        kind = ""
    if ("v7" in kind or "7x" in kind) and batch > 1:
        return 1
    return batch


# ------------------------- Multi-headed attention ----------------------------
def multi_headed_attention(params, inputs_k, inputs_v, inputs_q, mask,
                           num_heads=NUM_HEADS, batch_block=None):
    B, Sq, E = inputs_q.shape
    Sk = inputs_k.shape[1]
    d = E // num_heads

    # Reference module quirk: window_size_keys = K.shape[1] == num_heads.
    scale = 1.0 / math.sqrt(float(num_heads))

    # One-time weight prep (outside the kernel): transpose to [in, out] so the
    # kernel does plain x @ W, and fold the attention scale into the Q branch.
    wq_t = params["wq"].T * scale                      # [E, E]
    wk_t = params["wk"].T                              # [E, E]
    wv_t = params["wv"].T                              # [E, E]
    wo_t = params["wo"].T                              # [E, E]
    bq = (params["bq"] * scale).reshape(1, E)
    bk = params["bk"].reshape(1, E)
    bv = params["bv"].reshape(1, E)
    bo = params["bo"].reshape(1, E)

    if batch_block is None:
        batch_block = _batch_per_grid_step(B)
    assert B % batch_block == 0
    grid = (B // batch_block,)

    kern = functools.partial(_mha_fused_kernel, num_heads=num_heads, head_dim=d)

    def const_spec(shape):
        return pl.BlockSpec(shape, lambda b, _n=len(shape): (0,) * _n)

    return pl.pallas_call(
        kern,
        out_shape=jax.ShapeDtypeStruct((B, Sq, E), jnp.float32),
        grid=grid,
        in_specs=[
            pl.BlockSpec((batch_block, Sk, E), lambda b: (b, 0, 0)),   # inputs_k
            pl.BlockSpec((batch_block, Sk, E), lambda b: (b, 0, 0)),   # inputs_v
            pl.BlockSpec((batch_block, Sq, E), lambda b: (b, 0, 0)),   # inputs_q
            pl.BlockSpec((batch_block, Sq, Sk), lambda b: (b, 0, 0)),  # mask
            const_spec((E, E)),                                        # wk^T
            const_spec((1, E)),                                        # bk
            const_spec((E, E)),                                        # wv^T
            const_spec((1, E)),                                        # bv
            const_spec((E, E)),                                        # wq^T (scaled)
            const_spec((1, E)),                                        # bq  (scaled)
            const_spec((E, E)),                                        # wo^T
            const_spec((1, E)),                                        # bo
        ],
        out_specs=pl.BlockSpec((batch_block, Sq, E), lambda b: (b, 0, 0)),
        compiler_params=pltpu.CompilerParams(
            dimension_semantics=("parallel",)),
    )(inputs_k, inputs_v, inputs_q, mask, wk_t, bk, wv_t, bv, wq_t, bq, wo_t, bo)


# ------------------------------ Pure-JAX reference ---------------------------
def reference(params, inputs_k, inputs_v, inputs_q, mask, num_heads=NUM_HEADS):
    B, Sq, E = inputs_q.shape
    d = E // num_heads

    def lin(x, w, b):
        return x @ w.T + b

    def proj(x, w, b):
        return lin(x, w, b).reshape(B, -1, num_heads, d).transpose(0, 2, 1, 3)

    k = proj(inputs_k, params["wk"], params["bk"])
    v = proj(inputs_v, params["wv"], params["bv"])
    q = proj(inputs_q, params["wq"], params["bq"])
    scores = jnp.einsum("bhqd,bhkd->bhqk", q, k) / math.sqrt(float(num_heads))
    scores = jnp.where(mask[:, None] == 0, jnp.float32(-1e9), scores)
    p = jax.nn.softmax(scores, axis=-1)
    x = jnp.einsum("bhqk,bhkd->bhqd", p, v)
    x = x.transpose(0, 2, 1, 3).reshape(B, Sq, E)
    return lin(x, params["wo"], params["bo"])


# ------------------------------------ Main ------------------------------------
def init_params(key, embedding_size):
    bound = 1.0 / math.sqrt(embedding_size)
    keys = jax.random.split(key, 8)
    u = lambda k, shape: jax.random.uniform(k, shape, jnp.float32, -bound, bound)
    return {
        "wk": u(keys[0], (embedding_size, embedding_size)),
        "bk": u(keys[1], (embedding_size,)),
        "wv": u(keys[2], (embedding_size, embedding_size)),
        "bv": u(keys[3], (embedding_size,)),
        "wq": u(keys[4], (embedding_size, embedding_size)),
        "bq": u(keys[5], (embedding_size,)),
        "wo": u(keys[6], (embedding_size, embedding_size)),
        "bo": u(keys[7], (embedding_size,)),
    }


if __name__ == "__main__":
    B, S, E = 2, 8, 32                        # heads=8 -> head_dim=4

    root = jax.random.PRNGKey(0)
    kp, kk, kv, kq = jax.random.split(root, 4)

    params = init_params(kp, E)
    inputs_k = jax.random.normal(kk, (B, S, E), jnp.float32)
    inputs_v = jax.random.normal(kv, (B, S, E), jnp.float32)
    inputs_q = jax.random.normal(kq, (B, S, E), jnp.float32)
    # causal mask, [B, Sq, Sk]; forward does mask.unsqueeze(1) -> broadcast over heads
    mask = jnp.tile(jnp.tril(jnp.ones((S, S), jnp.float32))[None], (B, 1, 1))

    out = multi_headed_attention(params, inputs_k, inputs_v, inputs_q, mask)
    out = jax.block_until_ready(out)

    ref = jax.block_until_ready(reference(params, inputs_k, inputs_v, inputs_q, mask))
    assert out.shape == (B, S, E)
    assert jnp.allclose(out, ref, rtol=2e-3, atol=2e-3), (
        float(jnp.max(jnp.abs(out - ref))))

    print("KERNEL_OK")
</pallas_src>

<mosaic_0001>
module attributes {stable_mosaic.version = 11 : i64} {
  func.func @_mha_fused_kernel(%arg0: i32, %arg1: memref<2x8x32xf32, #tpu.memory_space<vmem>>, %arg2: memref<2x8x32xf32, #tpu.memory_space<vmem>>, %arg3: memref<2x8x32xf32, #tpu.memory_space<vmem>>, %arg4: memref<2x8x8xf32, #tpu.memory_space<vmem>>, %arg5: memref<32x32xf32, #tpu.memory_space<vmem>>, %arg6: memref<1x32xf32, #tpu.memory_space<vmem>>, %arg7: memref<32x32xf32, #tpu.memory_space<vmem>>, %arg8: memref<1x32xf32, #tpu.memory_space<vmem>>, %arg9: memref<32x32xf32, #tpu.memory_space<vmem>>, %arg10: memref<1x32xf32, #tpu.memory_space<vmem>>, %arg11: memref<32x32xf32, #tpu.memory_space<vmem>>, %arg12: memref<1x32xf32, #tpu.memory_space<vmem>>, %arg13: memref<2x8x32xf32, #tpu.memory_space<vmem>>) attributes {dimension_semantics = [#tpu.dimension_semantics<parallel>], iteration_bounds = array<i64: 1>, scalar_prefetch = 0 : i64, scratch_operands = 0 : i64, tpu.core_type = #tpu.core_type<tc>, window_params = [{transform_indices = @transform_0, window_bounds = array<i64: 2, 8, 32>}, {transform_indices = @transform_1, window_bounds = array<i64: 2, 8, 32>}, {transform_indices = @transform_2, window_bounds = array<i64: 2, 8, 32>}, {transform_indices = @transform_3, window_bounds = array<i64: 2, 8, 8>}, {pipeline_mode = #tpu.pipeline_mode<synchronous>, transform_indices = @transform_4, window_bounds = array<i64: 32, 32>}, {pipeline_mode = #tpu.pipeline_mode<synchronous>, transform_indices = @transform_5, window_bounds = array<i64: 1, 32>}, {pipeline_mode = #tpu.pipeline_mode<synchronous>, transform_indices = @transform_6, window_bounds = array<i64: 32, 32>}, {pipeline_mode = #tpu.pipeline_mode<synchronous>, transform_indices = @transform_7, window_bounds = array<i64: 1, 32>}, {pipeline_mode = #tpu.pipeline_mode<synchronous>, transform_indices = @transform_8, window_bounds = array<i64: 32, 32>}, {pipeline_mode = #tpu.pipeline_mode<synchronous>, transform_indices = @transform_9, window_bounds = array<i64: 1, 32>}, {pipeline_mode = #tpu.pipeline_mode<synchronous>, transform_indices = @transform_10, window_bounds = array<i64: 32, 32>}, {pipeline_mode = #tpu.pipeline_mode<synchronous>, transform_indices = @transform_11, window_bounds = array<i64: 1, 32>}, {transform_indices = @transform_12, window_bounds = array<i64: 2, 8, 32>}]} {
    %c0 = arith.constant 0 : index
    %c0_0 = arith.constant 0 : index
    %0 = vector.load %arg5[%c0, %c0_0] : memref<32x32xf32, #tpu.memory_space<vmem>>, vector<32x32xf32>
    %c0_1 = arith.constant 0 : index
    %c0_2 = arith.constant 0 : index
    %1 = vector.load %arg7[%c0_1, %c0_2] : memref<32x32xf32, #tpu.memory_space<vmem>>, vector<32x32xf32>
    %c0_3 = arith.constant 0 : index
    %c0_4 = arith.constant 0 : index
    %2 = vector.load %arg9[%c0_3, %c0_4] : memref<32x32xf32, #tpu.memory_space<vmem>>, vector<32x32xf32>
    %c0_5 = arith.constant 0 : index
    %c0_6 = arith.constant 0 : index
    %3 = vector.load %arg11[%c0_5, %c0_6] : memref<32x32xf32, #tpu.memory_space<vmem>>, vector<32x32xf32>
    %c0_7 = arith.constant 0 : index
    %c0_8 = arith.constant 0 : index
    %4 = vector.load %arg6[%c0_7, %c0_8] : memref<1x32xf32, #tpu.memory_space<vmem>>, vector<1x32xf32>
    %c0_9 = arith.constant 0 : index
    %c0_10 = arith.constant 0 : index
    %5 = vector.load %arg8[%c0_9, %c0_10] : memref<1x32xf32, #tpu.memory_space<vmem>>, vector<1x32xf32>
    %c0_11 = arith.constant 0 : index
    %c0_12 = arith.constant 0 : index
    %6 = vector.load %arg10[%c0_11, %c0_12] : memref<1x32xf32, #tpu.memory_space<vmem>>, vector<1x32xf32>
    %c0_13 = arith.constant 0 : index
    %c0_14 = arith.constant 0 : index
    %7 = vector.load %arg12[%c0_13, %c0_14] : memref<1x32xf32, #tpu.memory_space<vmem>>, vector<1x32xf32>
    %c0_15 = arith.constant 0 : index
    %c0_16 = arith.constant 0 : index
    %c0_17 = arith.constant 0 : index
    %8 = vector.load %arg1[%c0_15, %c0_16, %c0_17] : memref<2x8x32xf32, #tpu.memory_space<vmem>>, vector<1x8x32xf32>
    %9 = vector.shape_cast %8 : vector<1x8x32xf32> to vector<8x32xf32>
    %c0_18 = arith.constant 0 : index
    %c0_19 = arith.constant 0 : index
    %c0_20 = arith.constant 0 : index
    %10 = vector.load %arg2[%c0_18, %c0_19, %c0_20] : memref<2x8x32xf32, #tpu.memory_space<vmem>>, vector<1x8x32xf32>
    %11 = vector.shape_cast %10 : vector<1x8x32xf32> to vector<8x32xf32>
    %c0_21 = arith.constant 0 : index
    %c0_22 = arith.constant 0 : index
    %c0_23 = arith.constant 0 : index
    %12 = vector.load %arg3[%c0_21, %c0_22, %c0_23] : memref<2x8x32xf32, #tpu.memory_space<vmem>>, vector<1x8x32xf32>
    %13 = vector.shape_cast %12 : vector<1x8x32xf32> to vector<8x32xf32>
    %c0_24 = arith.constant 0 : index
    %c0_25 = arith.constant 0 : index
    %c0_26 = arith.constant 0 : index
    %14 = vector.load %arg4[%c0_24, %c0_25, %c0_26] : memref<2x8x8xf32, #tpu.memory_space<vmem>>, vector<1x8x8xf32>
    %15 = vector.shape_cast %14 : vector<1x8x8xf32> to vector<8x8xf32>
    %cst = arith.constant dense<0.000000e+00> : vector<8x32xf32>
    %16 = tpu.matmul %13, %2, %cst {dimension_numbers = #tpu.dot_dimension_numbers<[1], [0], [0], [1], [0, 0, 1, 1], [], []>} : vector<8x32xf32>, vector<32x32xf32>, vector<8x32xf32> -> vector<8x32xf32>
    %17 = vector.broadcast %6 : vector<1x32xf32> to vector<8x32xf32>
    %18 = arith.addf %16, %17 : vector<8x32xf32>
    %cst_27 = arith.constant dense<0.000000e+00> : vector<8x32xf32>
    %19 = tpu.matmul %9, %0, %cst_27 {dimension_numbers = #tpu.dot_dimension_numbers<[1], [0], [0], [1], [0, 0, 1, 1], [], []>} : vector<8x32xf32>, vector<32x32xf32>, vector<8x32xf32> -> vector<8x32xf32>
    %20 = vector.broadcast %4 : vector<1x32xf32> to vector<8x32xf32>
    %21 = arith.addf %19, %20 : vector<8x32xf32>
    %cst_28 = arith.constant dense<0.000000e+00> : vector<8x32xf32>
    %22 = tpu.matmul %11, %1, %cst_28 {dimension_numbers = #tpu.dot_dimension_numbers<[1], [0], [0], [1], [0, 0, 1, 1], [], []>} : vector<8x32xf32>, vector<32x32xf32>, vector<8x32xf32> -> vector<8x32xf32>
    %23 = vector.broadcast %5 : vector<1x32xf32> to vector<8x32xf32>
    %24 = arith.addf %22, %23 : vector<8x32xf32>
    %cst_29 = arith.constant 0.000000e+00 : f32
    %25 = vector.broadcast %cst_29 : f32 to vector<8x8xf32>
    %26 = arith.cmpf oeq, %15, %25 : vector<8x8xf32>
    %cst_30 = arith.constant -1.000000e+09 : f32
    %cst_31 = arith.constant 0.000000e+00 : f32
    %27 = vector.broadcast %cst_30 : f32 to vector<8x8xf32>
    %28 = vector.broadcast %cst_31 : f32 to vector<8x8xf32>
    %29 = arith.select %26, %27, %28 : vector<8x8xi1>, vector<8x8xf32>
    %30 = vector.extract_strided_slice %18 {offsets = [0, 0], sizes = [8, 4], strides = [1, 1]} : vector<8x32xf32> to vector<8x4xf32>
    %31 = vector.extract_strided_slice %21 {offsets = [0, 0], sizes = [8, 4], strides = [1, 1]} : vector<8x32xf32> to vector<8x4xf32>
    %32 = vector.extract_strided_slice %24 {offsets = [0, 0], sizes = [8, 4], strides = [1, 1]} : vector<8x32xf32> to vector<8x4xf32>
    %cst_32 = arith.constant dense<0.000000e+00> : vector<8x8xf32>
    %33 = tpu.matmul %30, %31, %cst_32 {dimension_numbers = #tpu.dot_dimension_numbers<[1], [1], [0], [0], [0, 0, 1, 0], [], []>} : vector<8x4xf32>, vector<8x4xf32>, vector<8x8xf32> -> vector<8x8xf32>
    %34 = arith.addf %33, %29 : vector<8x8xf32>
    %cst_33 = arith.constant dense<0xFF800000> : vector<8xf32>
    %35 = vector.multi_reduction <maximumf>, %34, %cst_33 [1] : vector<8x8xf32> to vector<8xf32>
    %36 = vector.shape_cast %35 : vector<8xf32> to vector<8x1xf32>
    %37 = vector.broadcast %36 : vector<8x1xf32> to vector<8x8xf32>
    %38 = arith.subf %34, %37 : vector<8x8xf32>
    %39 = math.exp %38 : vector<8x8xf32>
    %cst_34 = arith.constant dense<0.000000e+00> : vector<8xf32>
    %40 = vector.multi_reduction <add>, %39, %cst_34 [1] : vector<8x8xf32> to vector<8xf32>
    %41 = vector.shape_cast %40 : vector<8xf32> to vector<8x1xf32>
    %42 = tpu.reciprocal %41 {approx = true} : vector<8x1xf32> -> vector<8x1xf32>
    %43 = vector.broadcast %42 : vector<8x1xf32> to vector<8x8xf32>
    %44 = arith.mulf %39, %43 : vector<8x8xf32>
    %cst_35 = arith.constant dense<0.000000e+00> : vector<8x4xf32>
    %45 = tpu.matmul %44, %32, %cst_35 {dimension_numbers = #tpu.dot_dimension_numbers<[1], [0], [0], [1], [0, 0, 1, 1], [], []>} : vector<8x8xf32>, vector<8x4xf32>, vector<8x4xf32> -> vector<8x4xf32>
    %46 = vector.extract_strided_slice %18 {offsets = [0, 4], sizes = [8, 4], strides = [1, 1]} : vector<8x32xf32> to vector<8x4xf32>
    %47 = vector.extract_strided_slice %21 {offsets = [0, 4], sizes = [8, 4], strides = [1, 1]} : vector<8x32xf32> to vector<8x4xf32>
    %48 = vector.extract_strided_slice %24 {offsets = [0, 4], sizes = [8, 4], strides = [1, 1]} : vector<8x32xf32> to vector<8x4xf32>
    %cst_36 = arith.constant dense<0.000000e+00> : vector<8x8xf32>
    %49 = tpu.matmul %46, %47, %cst_36 {dimension_numbers = #tpu.dot_dimension_numbers<[1], [1], [0], [0], [0, 0, 1, 0], [], []>} : vector<8x4xf32>, vector<8x4xf32>, vector<8x8xf32> -> vector<8x8xf32>
    %50 = arith.addf %49, %29 : vector<8x8xf32>
    %cst_37 = arith.constant dense<0xFF800000> : vector<8xf32>
    %51 = vector.multi_reduction <maximumf>, %50, %cst_37 [1] : vector<8x8xf32> to vector<8xf32>
    %52 = vector.shape_cast %51 : vector<8xf32> to vector<8x1xf32>
    %53 = vector.broadcast %52 : vector<8x1xf32> to vector<8x8xf32>
    %54 = arith.subf %50, %53 : vector<8x8xf32>
    %55 = math.exp %54 : vector<8x8xf32>
    %cst_38 = arith.constant dense<0.000000e+00> : vector<8xf32>
    %56 = vector.multi_reduction <add>, %55, %cst_38 [1] : vector<8x8xf32> to vector<8xf32>
    %57 = vector.shape_cast %56 : vector<8xf32> to vector<8x1xf32>
    %58 = tpu.reciprocal %57 {approx = true} : vector<8x1xf32> -> vector<8x1xf32>
    %59 = vector.broadcast %58 : vector<8x1xf32> to vector<8x8xf32>
    %60 = arith.mulf %55, %59 : vector<8x8xf32>
    %cst_39 = arith.constant dense<0.000000e+00> : vector<8x4xf32>
    %61 = tpu.matmul %60, %48, %cst_39 {dimension_numbers = #tpu.dot_dimension_numbers<[1], [0], [0], [1], [0, 0, 1, 1], [], []>} : vector<8x8xf32>, vector<8x4xf32>, vector<8x4xf32> -> vector<8x4xf32>
    %62 = vector.extract_strided_slice %18 {offsets = [0, 8], sizes = [8, 4], strides = [1, 1]} : vector<8x32xf32> to vector<8x4xf32>
    %63 = vector.extract_strided_slice %21 {offsets = [0, 8], sizes = [8, 4], strides = [1, 1]} : vector<8x32xf32> to vector<8x4xf32>
    %64 = vector.extract_strided_slice %24 {offsets = [0, 8], sizes = [8, 4], strides = [1, 1]} : vector<8x32xf32> to vector<8x4xf32>
    %cst_40 = arith.constant dense<0.000000e+00> : vector<8x8xf32>
    %65 = tpu.matmul %62, %63, %cst_40 {dimension_numbers = #tpu.dot_dimension_numbers<[1], [1], [0], [0], [0, 0, 1, 0], [], []>} : vector<8x4xf32>, vector<8x4xf32>, vector<8x8xf32> -> vector<8x8xf32>
    %66 = arith.addf %65, %29 : vector<8x8xf32>
    %cst_41 = arith.constant dense<0xFF800000> : vector<8xf32>
    %67 = vector.multi_reduction <maximumf>, %66, %cst_41 [1] : vector<8x8xf32> to vector<8xf32>
    %68 = vector.shape_cast %67 : vector<8xf32> to vector<8x1xf32>
    %69 = vector.broadcast %68 : vector<8x1xf32> to vector<8x8xf32>
    %70 = arith.subf %66, %69 : vector<8x8xf32>
    %71 = math.exp %70 : vector<8x8xf32>
    %cst_42 = arith.constant dense<0.000000e+00> : vector<8xf32>
    %72 = vector.multi_reduction <add>, %71, %cst_42 [1] : vector<8x8xf32> to vector<8xf32>
    %73 = vector.shape_cast %72 : vector<8xf32> to vector<8x1xf32>
    %74 = tpu.reciprocal %73 {approx = true} : vector<8x1xf32> -> vector<8x1xf32>
    %75 = vector.broadcast %74 : vector<8x1xf32> to vector<8x8xf32>
    %76 = arith.mulf %71, %75 : vector<8x8xf32>
    %cst_43 = arith.constant dense<0.000000e+00> : vector<8x4xf32>
    %77 = tpu.matmul %76, %64, %cst_43 {dimension_numbers = #tpu.dot_dimension_numbers<[1], [0], [0], [1], [0, 0, 1, 1], [], []>} : vector<8x8xf32>, vector<8x4xf32>, vector<8x4xf32> -> vector<8x4xf32>
    %78 = vector.extract_strided_slice %18 {offsets = [0, 12], sizes = [8, 4], strides = [1, 1]} : vector<8x32xf32> to vector<8x4xf32>
    %79 = vector.extract_strided_slice %21 {offsets = [0, 12], sizes = [8, 4], strides = [1, 1]} : vector<8x32xf32> to vector<8x4xf32>
    %80 = vector.extract_strided_slice %24 {offsets = [0, 12], sizes = [8, 4], strides = [1, 1]} : vector<8x32xf32> to vector<8x4xf32>
    %cst_44 = arith.constant dense<0.000000e+00> : vector<8x8xf32>
    %81 = tpu.matmul %78, %79, %cst_44 {dimension_numbers = #tpu.dot_dimension_numbers<[1], [1], [0], [0], [0, 0, 1, 0], [], []>} : vector<8x4xf32>, vector<8x4xf32>, vector<8x8xf32> -> vector<8x8xf32>
    %82 = arith.addf %81, %29 : vector<8x8xf32>
    %cst_45 = arith.constant dense<0xFF800000> : vector<8xf32>
    %83 = vector.multi_reduction <maximumf>, %82, %cst_45 [1] : vector<8x8xf32> to vector<8xf32>
    %84 = vector.shape_cast %83 : vector<8xf32> to vector<8x1xf32>
    %85 = vector.broadcast %84 : vector<8x1xf32> to vector<8x8xf32>
    %86 = arith.subf %82, %85 : vector<8x8xf32>
    %87 = math.exp %86 : vector<8x8xf32>
    %cst_46 = arith.constant dense<0.000000e+00> : vector<8xf32>
    %88 = vector.multi_reduction <add>, %87, %cst_46 [1] : vector<8x8xf32> to vector<8xf32>
    %89 = vector.shape_cast %88 : vector<8xf32> to vector<8x1xf32>
    %90 = tpu.reciprocal %89 {approx = true} : vector<8x1xf32> -> vector<8x1xf32>
    %91 = vector.broadcast %90 : vector<8x1xf32> to vector<8x8xf32>
    %92 = arith.mulf %87, %91 : vector<8x8xf32>
    %cst_47 = arith.constant dense<0.000000e+00> : vector<8x4xf32>
    %93 = tpu.matmul %92, %80, %cst_47 {dimension_numbers = #tpu.dot_dimension_numbers<[1], [0], [0], [1], [0, 0, 1, 1], [], []>} : vector<8x8xf32>, vector<8x4xf32>, vector<8x4xf32> -> vector<8x4xf32>
    %94 = vector.extract_strided_slice %18 {offsets = [0, 16], sizes = [8, 4], strides = [1, 1]} : vector<8x32xf32> to vector<8x4xf32>
    %95 = vector.extract_strided_slice %21 {offsets = [0, 16], sizes = [8, 4], strides = [1, 1]} : vector<8x32xf32> to vector<8x4xf32>
    %96 = vector.extract_strided_slice %24 {offsets = [0, 16], sizes = [8, 4], strides = [1, 1]} : vector<8x32xf32> to vector<8x4xf32>
    %cst_48 = arith.constant dense<0.000000e+00> : vector<8x8xf32>
    %97 = tpu.matmul %94, %95, %cst_48 {dimension_numbers = #tpu.dot_dimension_numbers<[1], [1], [0], [0], [0, 0, 1, 0], [], []>} : vector<8x4xf32>, vector<8x4xf32>, vector<8x8xf32> -> vector<8x8xf32>
    %98 = arith.addf %97, %29 : vector<8x8xf32>
    %cst_49 = arith.constant dense<0xFF800000> : vector<8xf32>
    %99 = vector.multi_reduction <maximumf>, %98, %cst_49 [1] : vector<8x8xf32> to vector<8xf32>
    %100 = vector.shape_cast %99 : vector<8xf32> to vector<8x1xf32>
    %101 = vector.broadcast %100 : vector<8x1xf32> to vector<8x8xf32>
    %102 = arith.subf %98, %101 : vector<8x8xf32>
    %103 = math.exp %102 : vector<8x8xf32>
    %cst_50 = arith.constant dense<0.000000e+00> : vector<8xf32>
    %104 = vector.multi_reduction <add>, %103, %cst_50 [1] : vector<8x8xf32> to vector<8xf32>
    %105 = vector.shape_cast %104 : vector<8xf32> to vector<8x1xf32>
    %106 = tpu.reciprocal %105 {approx = true} : vector<8x1xf32> -> vector<8x1xf32>
    %107 = vector.broadcast %106 : vector<8x1xf32> to vector<8x8xf32>
    %108 = arith.mulf %103, %107 : vector<8x8xf32>
    %cst_51 = arith.constant dense<0.000000e+00> : vector<8x4xf32>
    %109 = tpu.matmul %108, %96, %cst_51 {dimension_numbers = #tpu.dot_dimension_numbers<[1], [0], [0], [1], [0, 0, 1, 1], [], []>} : vector<8x8xf32>, vector<8x4xf32>, vector<8x4xf32> -> vector<8x4xf32>
    %110 = vector.extract_strided_slice %18 {offsets = [0, 20], sizes = [8, 4], strides = [1, 1]} : vector<8x32xf32> to vector<8x4xf32>
    %111 = vector.extract_strided_slice %21 {offsets = [0, 20], sizes = [8, 4], strides = [1, 1]} : vector<8x32xf32> to vector<8x4xf32>
    %112 = vector.extract_strided_slice %24 {offsets = [0, 20], sizes = [8, 4], strides = [1, 1]} : vector<8x32xf32> to vector<8x4xf32>
    %cst_52 = arith.constant dense<0.000000e+00> : vector<8x8xf32>
    %113 = tpu.matmul %110, %111, %cst_52 {dimension_numbers = #tpu.dot_dimension_numbers<[1], [1], [0], [0], [0, 0, 1, 0], [], []>} : vector<8x4xf32>, vector<8x4xf32>, vector<8x8xf32> -> vector<8x8xf32>
    %114 = arith.addf %113, %29 : vector<8x8xf32>
    %cst_53 = arith.constant dense<0xFF800000> : vector<8xf32>
    %115 = vector.multi_reduction <maximumf>, %114, %cst_53 [1] : vector<8x8xf32> to vector<8xf32>
    %116 = vector.shape_cast %115 : vector<8xf32> to vector<8x1xf32>
    %117 = vector.broadcast %116 : vector<8x1xf32> to vector<8x8xf32>
    %118 = arith.subf %114, %117 : vector<8x8xf32>
    %119 = math.exp %118 : vector<8x8xf32>
    %cst_54 = arith.constant dense<0.000000e+00> : vector<8xf32>
    %120 = vector.multi_reduction <add>, %119, %cst_54 [1] : vector<8x8xf32> to vector<8xf32>
    %121 = vector.shape_cast %120 : vector<8xf32> to vector<8x1xf32>
    %122 = tpu.reciprocal %121 {approx = true} : vector<8x1xf32> -> vector<8x1xf32>
    %123 = vector.broadcast %122 : vector<8x1xf32> to vector<8x8xf32>
    %124 = arith.mulf %119, %123 : vector<8x8xf32>
    %cst_55 = arith.constant dense<0.000000e+00> : vector<8x4xf32>
    %125 = tpu.matmul %124, %112, %cst_55 {dimension_numbers = #tpu.dot_dimension_numbers<[1], [0], [0], [1], [0, 0, 1, 1], [], []>} : vector<8x8xf32>, vector<8x4xf32>, vector<8x4xf32> -> vector<8x4xf32>
    %126 = vector.extract_strided_slice %18 {offsets = [0, 24], sizes = [8, 4], strides = [1, 1]} : vector<8x32xf32> to vector<8x4xf32>
    %127 = vector.extract_strided_slice %21 {offsets = [0, 24], sizes = [8, 4], strides = [1, 1]} : vector<8x32xf32> to vector<8x4xf32>
    %128 = vector.extract_strided_slice %24 {offsets = [0, 24], sizes = [8, 4], strides = [1, 1]} : vector<8x32xf32> to vector<8x4xf32>
    %cst_56 = arith.constant dense<0.000000e+00> : vector<8x8xf32>
    %129 = tpu.matmul %126, %127, %cst_56 {dimension_numbers = #tpu.dot_dimension_numbers<[1], [1], [0], [0], [0, 0, 1, 0], [], []>} : vector<8x4xf32>, vector<8x4xf32>, vector<8x8xf32> -> vector<8x8xf32>
    %130 = arith.addf %129, %29 : vector<8x8xf32>
    %cst_57 = arith.constant dense<0xFF800000> : vector<8xf32>
    %131 = vector.multi_reduction <maximumf>, %130, %cst_57 [1] : vector<8x8xf32> to vector<8xf32>
    %132 = vector.shape_cast %131 : vector<8xf32> to vector<8x1xf32>
    %133 = vector.broadcast %132 : vector<8x1xf32> to vector<8x8xf32>
    %134 = arith.subf %130, %133 : vector<8x8xf32>
    %135 = math.exp %134 : vector<8x8xf32>
    %cst_58 = arith.constant dense<0.000000e+00> : vector<8xf32>
    %136 = vector.multi_reduction <add>, %135, %cst_58 [1] : vector<8x8xf32> to vector<8xf32>
    %137 = vector.shape_cast %136 : vector<8xf32> to vector<8x1xf32>
    %138 = tpu.reciprocal %137 {approx = true} : vector<8x1xf32> -> vector<8x1xf32>
    %139 = vector.broadcast %138 : vector<8x1xf32> to vector<8x8xf32>
    %140 = arith.mulf %135, %139 : vector<8x8xf32>
    %cst_59 = arith.constant dense<0.000000e+00> : vector<8x4xf32>
    %141 = tpu.matmul %140, %128, %cst_59 {dimension_numbers = #tpu.dot_dimension_numbers<[1], [0], [0], [1], [0, 0, 1, 1], [], []>} : vector<8x8xf32>, vector<8x4xf32>, vector<8x4xf32> -> vector<8x4xf32>
    %142 = vector.extract_strided_slice %18 {offsets = [0, 28], sizes = [8, 4], strides = [1, 1]} : vector<8x32xf32> to vector<8x4xf32>
    %143 = vector.extract_strided_slice %21 {offsets = [0, 28], sizes = [8, 4], strides = [1, 1]} : vector<8x32xf32> to vector<8x4xf32>
    %144 = vector.extract_strided_slice %24 {offsets = [0, 28], sizes = [8, 4], strides = [1, 1]} : vector<8x32xf32> to vector<8x4xf32>
    %cst_60 = arith.constant dense<0.000000e+00> : vector<8x8xf32>
    %145 = tpu.matmul %142, %143, %cst_60 {dimension_numbers = #tpu.dot_dimension_numbers<[1], [1], [0], [0], [0, 0, 1, 0], [], []>} : vector<8x4xf32>, vector<8x4xf32>, vector<8x8xf32> -> vector<8x8xf32>
    %146 = arith.addf %145, %29 : vector<8x8xf32>
    %cst_61 = arith.constant dense<0xFF800000> : vector<8xf32>
    %147 = vector.multi_reduction <maximumf>, %146, %cst_61 [1] : vector<8x8xf32> to vector<8xf32>
    %148 = vector.shape_cast %147 : vector<8xf32> to vector<8x1xf32>
    %149 = vector.broadcast %148 : vector<8x1xf32> to vector<8x8xf32>
    %150 = arith.subf %146, %149 : vector<8x8xf32>
    %151 = math.exp %150 : vector<8x8xf32>
    %cst_62 = arith.constant dense<0.000000e+00> : vector<8xf32>
    %152 = vector.multi_reduction <add>, %151, %cst_62 [1] : vector<8x8xf32> to vector<8xf32>
    %153 = vector.shape_cast %152 : vector<8xf32> to vector<8x1xf32>
    %154 = tpu.reciprocal %153 {approx = true} : vector<8x1xf32> -> vector<8x1xf32>
    %155 = vector.broadcast %154 : vector<8x1xf32> to vector<8x8xf32>
    %156 = arith.mulf %151, %155 : vector<8x8xf32>
    %cst_63 = arith.constant dense<0.000000e+00> : vector<8x4xf32>
    %157 = tpu.matmul %156, %144, %cst_63 {dimension_numbers = #tpu.dot_dimension_numbers<[1], [0], [0], [1], [0, 0, 1, 1], [], []>} : vector<8x8xf32>, vector<8x4xf32>, vector<8x4xf32> -> vector<8x4xf32>
    %158 = tpu.concatenate %45, %61, %77, %93, %109, %125, %141, %157 in 1 : vector<8x4xf32>, vector<8x4xf32>, vector<8x4xf32>, vector<8x4xf32>, vector<8x4xf32>, vector<8x4xf32>, vector<8x4xf32>, vector<8x4xf32> -> vector<8x32xf32>
    %cst_64 = arith.constant dense<0.000000e+00> : vector<8x32xf32>
    %159 = tpu.matmul %158, %3, %cst_64 {dimension_numbers = #tpu.dot_dimension_numbers<[1], [0], [0], [1], [0, 0, 1, 1], [], []>} : vector<8x32xf32>, vector<32x32xf32>, vector<8x32xf32> -> vector<8x32xf32>
    %160 = vector.broadcast %7 : vector<1x32xf32> to vector<8x32xf32>
    %161 = arith.addf %159, %160 : vector<8x32xf32>
    %c0_65 = arith.constant 0 : index
    %c0_66 = arith.constant 0 : index
    %c0_67 = arith.constant 0 : index
    %162 = vector.load %arg13[%c0_65, %c0_66, %c0_67] : memref<2x8x32xf32, #tpu.memory_space<vmem>>, vector<1x8x32xf32>
    %163 = vector.shape_cast %162 : vector<1x8x32xf32> to vector<8x32xf32>
    %164 = vector.shape_cast %161 : vector<8x32xf32> to vector<1x8x32xf32>
    tpu.vector_store %arg13[%c0_65, %c0_66, %c0_67], %164 {strides = array<i32>} : memref<2x8x32xf32, #tpu.memory_space<vmem>>, vector<1x8x32xf32>,
    %c1 = arith.constant 1 : index
    %c0_68 = arith.constant 0 : index
    %c0_69 = arith.constant 0 : index
    %165 = vector.load %arg1[%c1, %c0_68, %c0_69] : memref<2x8x32xf32, #tpu.memory_space<vmem>>, vector<1x8x32xf32>
    %166 = vector.shape_cast %165 : vector<1x8x32xf32> to vector<8x32xf32>
    %c1_70 = arith.constant 1 : index
    %c0_71 = arith.constant 0 : index
    %c0_72 = arith.constant 0 : index
    %167 = vector.load %arg2[%c1_70, %c0_71, %c0_72] : memref<2x8x32xf32, #tpu.memory_space<vmem>>, vector<1x8x32xf32>
    %168 = vector.shape_cast %167 : vector<1x8x32xf32> to vector<8x32xf32>
    %c1_73 = arith.constant 1 : index
    %c0_74 = arith.constant 0 : index
    %c0_75 = arith.constant 0 : index
    %169 = vector.load %arg3[%c1_73, %c0_74, %c0_75] : memref<2x8x32xf32, #tpu.memory_space<vmem>>, vector<1x8x32xf32>
    %170 = vector.shape_cast %169 : vector<1x8x32xf32> to vector<8x32xf32>
    %c1_76 = arith.constant 1 : index
    %c0_77 = arith.constant 0 : index
    %c0_78 = arith.constant 0 : index
    %171 = vector.load %arg4[%c1_76, %c0_77, %c0_78] : memref<2x8x8xf32, #tpu.memory_space<vmem>>, vector<1x8x8xf32>
    %172 = vector.shape_cast %171 : vector<1x8x8xf32> to vector<8x8xf32>
    %cst_79 = arith.constant dense<0.000000e+00> : vector<8x32xf32>
    %173 = tpu.matmul %170, %2, %cst_79 {dimension_numbers = #tpu.dot_dimension_numbers<[1], [0], [0], [1], [0, 0, 1, 1], [], []>} : vector<8x32xf32>, vector<32x32xf32>, vector<8x32xf32> -> vector<8x32xf32>
    %174 = vector.broadcast %6 : vector<1x32xf32> to vector<8x32xf32>
    %175 = arith.addf %173, %174 : vector<8x32xf32>
    %cst_80 = arith.constant dense<0.000000e+00> : vector<8x32xf32>
    %176 = tpu.matmul %166, %0, %cst_80 {dimension_numbers = #tpu.dot_dimension_numbers<[1], [0], [0], [1], [0, 0, 1, 1], [], []>} : vector<8x32xf32>, vector<32x32xf32>, vector<8x32xf32> -> vector<8x32xf32>
    %177 = vector.broadcast %4 : vector<1x32xf32> to vector<8x32xf32>
    %178 = arith.addf %176, %177 : vector<8x32xf32>
    %cst_81 = arith.constant dense<0.000000e+00> : vector<8x32xf32>
    %179 = tpu.matmul %168, %1, %cst_81 {dimension_numbers = #tpu.dot_dimension_numbers<[1], [0], [0], [1], [0, 0, 1, 1], [], []>} : vector<8x32xf32>, vector<32x32xf32>, vector<8x32xf32> -> vector<8x32xf32>
    %180 = vector.broadcast %5 : vector<1x32xf32> to vector<8x32xf32>
    %181 = arith.addf %179, %180 : vector<8x32xf32>
    %cst_82 = arith.constant 0.000000e+00 : f32
    %182 = vector.broadcast %cst_82 : f32 to vector<8x8xf32>
    %183 = arith.cmpf oeq, %172, %182 : vector<8x8xf32>
    %cst_83 = arith.constant -1.000000e+09 : f32
    %cst_84 = arith.constant 0.000000e+00 : f32
    %184 = vector.broadcast %cst_83 : f32 to vector<8x8xf32>
    %185 = vector.broadcast %cst_84 : f32 to vector<8x8xf32>
    %186 = arith.select %183, %184, %185 : vector<8x8xi1>, vector<8x8xf32>
    %187 = vector.extract_strided_slice %175 {offsets = [0, 0], sizes = [8, 4], strides = [1, 1]} : vector<8x32xf32> to vector<8x4xf32>
    %188 = vector.extract_strided_slice %178 {offsets = [0, 0], sizes = [8, 4], strides = [1, 1]} : vector<8x32xf32> to vector<8x4xf32>
    %189 = vector.extract_strided_slice %181 {offsets = [0, 0], sizes = [8, 4], strides = [1, 1]} : vector<8x32xf32> to vector<8x4xf32>
    %cst_85 = arith.constant dense<0.000000e+00> : vector<8x8xf32>
    %190 = tpu.matmul %187, %188, %cst_85 {dimension_numbers = #tpu.dot_dimension_numbers<[1], [1], [0], [0], [0, 0, 1, 0], [], []>} : vector<8x4xf32>, vector<8x4xf32>, vector<8x8xf32> -> vector<8x8xf32>
    %191 = arith.addf %190, %186 : vector<8x8xf32>
    %cst_86 = arith.constant dense<0xFF800000> : vector<8xf32>
    %192 = vector.multi_reduction <maximumf>, %191, %cst_86 [1] : vector<8x8xf32> to vector<8xf32>
    %193 = vector.shape_cast %192 : vector<8xf32> to vector<8x1xf32>
    %194 = vector.broadcast %193 : vector<8x1xf32> to vector<8x8xf32>
    %195 = arith.subf %191, %194 : vector<8x8xf32>
    %196 = math.exp %195 : vector<8x8xf32>
    %cst_87 = arith.constant dense<0.000000e+00> : vector<8xf32>
    %197 = vector.multi_reduction <add>, %196, %cst_87 [1] : vector<8x8xf32> to vector<8xf32>
    %198 = vector.shape_cast %197 : vector<8xf32> to vector<8x1xf32>
    %199 = tpu.reciprocal %198 {approx = true} : vector<8x1xf32> -> vector<8x1xf32>
    %200 = vector.broadcast %199 : vector<8x1xf32> to vector<8x8xf32>
    %201 = arith.mulf %196, %200 : vector<8x8xf32>
    %cst_88 = arith.constant dense<0.000000e+00> : vector<8x4xf32>
    %202 = tpu.matmul %201, %189, %cst_88 {dimension_numbers = #tpu.dot_dimension_numbers<[1], [0], [0], [1], [0, 0, 1, 1], [], []>} : vector<8x8xf32>, vector<8x4xf32>, vector<8x4xf32> -> vector<8x4xf32>
    %203 = vector.extract_strided_slice %175 {offsets = [0, 4], sizes = [8, 4], strides = [1, 1]} : vector<8x32xf32> to vector<8x4xf32>
    %204 = vector.extract_strided_slice %178 {offsets = [0, 4], sizes = [8, 4], strides = [1, 1]} : vector<8x32xf32> to vector<8x4xf32>
    %205 = vector.extract_strided_slice %181 {offsets = [0, 4], sizes = [8, 4], strides = [1, 1]} : vector<8x32xf32> to vector<8x4xf32>
    %cst_89 = arith.constant dense<0.000000e+00> : vector<8x8xf32>
    %206 = tpu.matmul %203, %204, %cst_89 {dimension_numbers = #tpu.dot_dimension_numbers<[1], [1], [0], [0], [0, 0, 1, 0], [], []>} : vector<8x4xf32>, vector<8x4xf32>, vector<8x8xf32> -> vector<8x8xf32>
    %207 = arith.addf %206, %186 : vector<8x8xf32>
    %cst_90 = arith.constant dense<0xFF800000> : vector<8xf32>
    %208 = vector.multi_reduction <maximumf>, %207, %cst_90 [1] : vector<8x8xf32> to vector<8xf32>
    %209 = vector.shape_cast %208 : vector<8xf32> to vector<8x1xf32>
    %210 = vector.broadcast %209 : vector<8x1xf32> to vector<8x8xf32>
    %211 = arith.subf %207, %210 : vector<8x8xf32>
    %212 = math.exp %211 : vector<8x8xf32>
    %cst_91 = arith.constant dense<0.000000e+00> : vector<8xf32>
    %213 = vector.multi_reduction <add>, %212, %cst_91 [1] : vector<8x8xf32> to vector<8xf32>
    %214 = vector.shape_cast %213 : vector<8xf32> to vector<8x1xf32>
    %215 = tpu.reciprocal %214 {approx = true} : vector<8x1xf32> -> vector<8x1xf32>
    %216 = vector.broadcast %215 : vector<8x1xf32> to vector<8x8xf32>
    %217 = arith.mulf %212, %216 : vector<8x8xf32>
    %cst_92 = arith.constant dense<0.000000e+00> : vector<8x4xf32>
    %218 = tpu.matmul %217, %205, %cst_92 {dimension_numbers = #tpu.dot_dimension_numbers<[1], [0], [0], [1], [0, 0, 1, 1], [], []>} : vector<8x8xf32>, vector<8x4xf32>, vector<8x4xf32> -> vector<8x4xf32>
    %219 = vector.extract_strided_slice %175 {offsets = [0, 8], sizes = [8, 4], strides = [1, 1]} : vector<8x32xf32> to vector<8x4xf32>
    %220 = vector.extract_strided_slice %178 {offsets = [0, 8], sizes = [8, 4], strides = [1, 1]} : vector<8x32xf32> to vector<8x4xf32>
    %221 = vector.extract_strided_slice %181 {offsets = [0, 8], sizes = [8, 4], strides = [1, 1]} : vector<8x32xf32> to vector<8x4xf32>
    %cst_93 = arith.constant dense<0.000000e+00> : vector<8x8xf32>
    %222 = tpu.matmul %219, %220, %cst_93 {dimension_numbers = #tpu.dot_dimension_numbers<[1], [1], [0], [0], [0, 0, 1, 0], [], []>} : vector<8x4xf32>, vector<8x4xf32>, vector<8x8xf32> -> vector<8x8xf32>
    %223 = arith.addf %222, %186 : vector<8x8xf32>
    %cst_94 = arith.constant dense<0xFF800000> : vector<8xf32>
    %224 = vector.multi_reduction <maximumf>, %223, %cst_94 [1] : vector<8x8xf32> to vector<8xf32>
    %225 = vector.shape_cast %224 : vector<8xf32> to vector<8x1xf32>
    %226 = vector.broadcast %225 : vector<8x1xf32> to vector<8x8xf32>
    %227 = arith.subf %223, %226 : vector<8x8xf32>
    %228 = math.exp %227 : vector<8x8xf32>
    %cst_95 = arith.constant dense<0.000000e+00> : vector<8xf32>
    %229 = vector.multi_reduction <add>, %228, %cst_95 [1] : vector<8x8xf32> to vector<8xf32>
    %230 = vector.shape_cast %229 : vector<8xf32> to vector<8x1xf32>
    %231 = tpu.reciprocal %230 {approx = true} : vector<8x1xf32> -> vector<8x1xf32>
    %232 = vector.broadcast %231 : vector<8x1xf32> to vector<8x8xf32>
    %233 = arith.mulf %228, %232 : vector<8x8xf32>
    %cst_96 = arith.constant dense<0.000000e+00> : vector<8x4xf32>
    %234 = tpu.matmul %233, %221, %cst_96 {dimension_numbers = #tpu.dot_dimension_numbers<[1], [0], [0], [1], [0, 0, 1, 1], [], []>} : vector<8x8xf32>, vector<8x4xf32>, vector<8x4xf32> -> vector<8x4xf32>
    %235 = vector.extract_strided_slice %175 {offsets = [0, 12], sizes = [8, 4], strides = [1, 1]} : vector<8x32xf32> to vector<8x4xf32>
    %236 = vector.extract_strided_slice %178 {offsets = [0, 12], sizes = [8, 4], strides = [1, 1]} : vector<8x32xf32> to vector<8x4xf32>
    %237 = vector.extract_strided_slice %181 {offsets = [0, 12], sizes = [8, 4], strides = [1, 1]} : vector<8x32xf32> to vector<8x4xf32>
    %cst_97 = arith.constant dense<0.000000e+00> : vector<8x8xf32>
    %238 = tpu.matmul %235, %236, %cst_97 {dimension_numbers = #tpu.dot_dimension_numbers<[1], [1], [0], [0], [0, 0, 1, 0], [], []>} : vector<8x4xf32>, vector<8x4xf32>, vector<8x8xf32> -> vector<8x8xf32>
    %239 = arith.addf %238, %186 : vector<8x8xf32>
    %cst_98 = arith.constant dense<0xFF800000> : vector<8xf32>
    %240 = vector.multi_reduction <maximumf>, %239, %cst_98 [1] : vector<8x8xf32> to vector<8xf32>
    %241 = vector.shape_cast %240 : vector<8xf32> to vector<8x1xf32>
    %242 = vector.broadcast %241 : vector<8x1xf32> to vector<8x8xf32>
    %243 = arith.subf %239, %242 : vector<8x8xf32>
    %244 = math.exp %243 : vector<8x8xf32>
    %cst_99 = arith.constant dense<0.000000e+00> : vector<8xf32>
    %245 = vector.multi_reduction <add>, %244, %cst_99 [1] : vector<8x8xf32> to vector<8xf32>
    %246 = vector.shape_cast %245 : vector<8xf32> to vector<8x1xf32>
    %247 = tpu.reciprocal %246 {approx = true} : vector<8x1xf32> -> vector<8x1xf32>
    %248 = vector.broadcast %247 : vector<8x1xf32> to vector<8x8xf32>
    %249 = arith.mulf %244, %248 : vector<8x8xf32>
    %cst_100 = arith.constant dense<0.000000e+00> : vector<8x4xf32>
    %250 = tpu.matmul %249, %237, %cst_100 {dimension_numbers = #tpu.dot_dimension_numbers<[1], [0], [0], [1], [0, 0, 1, 1], [], []>} : vector<8x8xf32>, vector<8x4xf32>, vector<8x4xf32> -> vector<8x4xf32>
    %251 = vector.extract_strided_slice %175 {offsets = [0, 16], sizes = [8, 4], strides = [1, 1]} : vector<8x32xf32> to vector<8x4xf32>
    %252 = vector.extract_strided_slice %178 {offsets = [0, 16], sizes = [8, 4], strides = [1, 1]} : vector<8x32xf32> to vector<8x4xf32>
    %253 = vector.extract_strided_slice %181 {offsets = [0, 16], sizes = [8, 4], strides = [1, 1]} : vector<8x32xf32> to vector<8x4xf32>
    %cst_101 = arith.constant dense<0.000000e+00> : vector<8x8xf32>
    %254 = tpu.matmul %251, %252, %cst_101 {dimension_numbers = #tpu.dot_dimension_numbers<[1], [1], [0], [0], [0, 0, 1, 0], [], []>} : vector<8x4xf32>, vector<8x4xf32>, vector<8x8xf32> -> vector<8x8xf32>
    %255 = arith.addf %254, %186 : vector<8x8xf32>
    %cst_102 = arith.constant dense<0xFF800000> : vector<8xf32>
    %256 = vector.multi_reduction <maximumf>, %255, %cst_102 [1] : vector<8x8xf32> to vector<8xf32>
    %257 = vector.shape_cast %256 : vector<8xf32> to vector<8x1xf32>
    %258 = vector.broadcast %257 : vector<8x1xf32> to vector<8x8xf32>
    %259 = arith.subf %255, %258 : vector<8x8xf32>
    %260 = math.exp %259 : vector<8x8xf32>
    %cst_103 = arith.constant dense<0.000000e+00> : vector<8xf32>
    %261 = vector.multi_reduction <add>, %260, %cst_103 [1] : vector<8x8xf32> to vector<8xf32>
    %262 = vector.shape_cast %261 : vector<8xf32> to vector<8x1xf32>
    %263 = tpu.reciprocal %262 {approx = true} : vector<8x1xf32> -> vector<8x1xf32>
    %264 = vector.broadcast %263 : vector<8x1xf32> to vector<8x8xf32>
    %265 = arith.mulf %260, %264 : vector<8x8xf32>
    %cst_104 = arith.constant dense<0.000000e+00> : vector<8x4xf32>
    %266 = tpu.matmul %265, %253, %cst_104 {dimension_numbers = #tpu.dot_dimension_numbers<[1], [0], [0], [1], [0, 0, 1, 1], [], []>} : vector<8x8xf32>, vector<8x4xf32>, vector<8x4xf32> -> vector<8x4xf32>
    %267 = vector.extract_strided_slice %175 {offsets = [0, 20], sizes = [8, 4], strides = [1, 1]} : vector<8x32xf32> to vector<8x4xf32>
    %268 = vector.extract_strided_slice %178 {offsets = [0, 20], sizes = [8, 4], strides = [1, 1]} : vector<8x32xf32> to vector<8x4xf32>
    %269 = vector.extract_strided_slice %181 {offsets = [0, 20], sizes = [8, 4], strides = [1, 1]} : vector<8x32xf32> to vector<8x4xf32>
    %cst_105 = arith.constant dense<0.000000e+00> : vector<8x8xf32>
    %270 = tpu.matmul %267, %268, %cst_105 {dimension_numbers = #tpu.dot_dimension_numbers<[1], [1], [0], [0], [0, 0, 1, 0], [], []>} : vector<8x4xf32>, vector<8x4xf32>, vector<8x8xf32> -> vector<8x8xf32>
    %271 = arith.addf %270, %186 : vector<8x8xf32>
    %cst_106 = arith.constant dense<0xFF800000> : vector<8xf32>
    %272 = vector.multi_reduction <maximumf>, %271, %cst_106 [1] : vector<8x8xf32> to vector<8xf32>
    %273 = vector.shape_cast %272 : vector<8xf32> to vector<8x1xf32>
    %274 = vector.broadcast %273 : vector<8x1xf32> to vector<8x8xf32>
    %275 = arith.subf %271, %274 : vector<8x8xf32>
    %276 = math.exp %275 : vector<8x8xf32>
    %cst_107 = arith.constant dense<0.000000e+00> : vector<8xf32>
    %277 = vector.multi_reduction <add>, %276, %cst_107 [1] : vector<8x8xf32> to vector<8xf32>
    %278 = vector.shape_cast %277 : vector<8xf32> to vector<8x1xf32>
    %279 = tpu.reciprocal %278 {approx = true} : vector<8x1xf32> -> vector<8x1xf32>
    %280 = vector.broadcast %279 : vector<8x1xf32> to vector<8x8xf32>
    %281 = arith.mulf %276, %280 : vector<8x8xf32>
    %cst_108 = arith.constant dense<0.000000e+00> : vector<8x4xf32>
    %282 = tpu.matmul %281, %269, %cst_108 {dimension_numbers = #tpu.dot_dimension_numbers<[1], [0], [0], [1], [0, 0, 1, 1], [], []>} : vector<8x8xf32>, vector<8x4xf32>, vector<8x4xf32> -> vector<8x4xf32>
    %283 = vector.extract_strided_slice %175 {offsets = [0, 24], sizes = [8, 4], strides = [1, 1]} : vector<8x32xf32> to vector<8x4xf32>
    %284 = vector.extract_strided_slice %178 {offsets = [0, 24], sizes = [8, 4], strides = [1, 1]} : vector<8x32xf32> to vector<8x4xf32>
    %285 = vector.extract_strided_slice %181 {offsets = [0, 24], sizes = [8, 4], strides = [1, 1]} : vector<8x32xf32> to vector<8x4xf32>
    %cst_109 = arith.constant dense<0.000000e+00> : vector<8x8xf32>
    %286 = tpu.matmul %283, %284, %cst_109 {dimension_numbers = #tpu.dot_dimension_numbers<[1], [1], [0], [0], [0, 0, 1, 0], [], []>} : vector<8x4xf32>, vector<8x4xf32>, vector<8x8xf32> -> vector<8x8xf32>
    %287 = arith.addf %286, %186 : vector<8x8xf32>
    %cst_110 = arith.constant dense<0xFF800000> : vector<8xf32>
    %288 = vector.multi_reduction <maximumf>, %287, %cst_110 [1] : vector<8x8xf32> to vector<8xf32>
    %289 = vector.shape_cast %288 : vector<8xf32> to vector<8x1xf32>
    %290 = vector.broadcast %289 : vector<8x1xf32> to vector<8x8xf32>
    %291 = arith.subf %287, %290 : vector<8x8xf32>
    %292 = math.exp %291 : vector<8x8xf32>
    %cst_111 = arith.constant dense<0.000000e+00> : vector<8xf32>
    %293 = vector.multi_reduction <add>, %292, %cst_111 [1] : vector<8x8xf32> to vector<8xf32>
    %294 = vector.shape_cast %293 : vector<8xf32> to vector<8x1xf32>
    %295 = tpu.reciprocal %294 {approx = true} : vector<8x1xf32> -> vector<8x1xf32>
    %296 = vector.broadcast %295 : vector<8x1xf32> to vector<8x8xf32>
    %297 = arith.mulf %292, %296 : vector<8x8xf32>
    %cst_112 = arith.constant dense<0.000000e+00> : vector<8x4xf32>
    %298 = tpu.matmul %297, %285, %cst_112 {dimension_numbers = #tpu.dot_dimension_numbers<[1], [0], [0], [1], [0, 0, 1, 1], [], []>} : vector<8x8xf32>, vector<8x4xf32>, vector<8x4xf32> -> vector<8x4xf32>
    %299 = vector.extract_strided_slice %175 {offsets = [0, 28], sizes = [8, 4], strides = [1, 1]} : vector<8x32xf32> to vector<8x4xf32>
    %300 = vector.extract_strided_slice %178 {offsets = [0, 28], sizes = [8, 4], strides = [1, 1]} : vector<8x32xf32> to vector<8x4xf32>
    %301 = vector.extract_strided_slice %181 {offsets = [0, 28], sizes = [8, 4], strides = [1, 1]} : vector<8x32xf32> to vector<8x4xf32>
    %cst_113 = arith.constant dense<0.000000e+00> : vector<8x8xf32>
    %302 = tpu.matmul %299, %300, %cst_113 {dimension_numbers = #tpu.dot_dimension_numbers<[1], [1], [0], [0], [0, 0, 1, 0], [], []>} : vector<8x4xf32>, vector<8x4xf32>, vector<8x8xf32> -> vector<8x8xf32>
    %303 = arith.addf %302, %186 : vector<8x8xf32>
    %cst_114 = arith.constant dense<0xFF800000> : vector<8xf32>
    %304 = vector.multi_reduction <maximumf>, %303, %cst_114 [1] : vector<8x8xf32> to vector<8xf32>
    %305 = vector.shape_cast %304 : vector<8xf32> to vector<8x1xf32>
    %306 = vector.broadcast %305 : vector<8x1xf32> to vector<8x8xf32>
    %307 = arith.subf %303, %306 : vector<8x8xf32>
    %308 = math.exp %307 : vector<8x8xf32>
    %cst_115 = arith.constant dense<0.000000e+00> : vector<8xf32>
    %309 = vector.multi_reduction <add>, %308, %cst_115 [1] : vector<8x8xf32> to vector<8xf32>
    %310 = vector.shape_cast %309 : vector<8xf32> to vector<8x1xf32>
    %311 = tpu.reciprocal %310 {approx = true} : vector<8x1xf32> -> vector<8x1xf32>
    %312 = vector.broadcast %311 : vector<8x1xf32> to vector<8x8xf32>
    %313 = arith.mulf %308, %312 : vector<8x8xf32>
    %cst_116 = arith.constant dense<0.000000e+00> : vector<8x4xf32>
    %314 = tpu.matmul %313, %301, %cst_116 {dimension_numbers = #tpu.dot_dimension_numbers<[1], [0], [0], [1], [0, 0, 1, 1], [], []>} : vector<8x8xf32>, vector<8x4xf32>, vector<8x4xf32> -> vector<8x4xf32>
    %315 = tpu.concatenate %202, %218, %234, %250, %266, %282, %298, %314 in 1 : vector<8x4xf32>, vector<8x4xf32>, vector<8x4xf32>, vector<8x4xf32>, vector<8x4xf32>, vector<8x4xf32>, vector<8x4xf32>, vector<8x4xf32> -> vector<8x32xf32>
    %cst_117 = arith.constant dense<0.000000e+00> : vector<8x32xf32>
    %316 = tpu.matmul %315, %3, %cst_117 {dimension_numbers = #tpu.dot_dimension_numbers<[1], [0], [0], [1], [0, 0, 1, 1], [], []>} : vector<8x32xf32>, vector<32x32xf32>, vector<8x32xf32> -> vector<8x32xf32>
    %317 = vector.broadcast %7 : vector<1x32xf32> to vector<8x32xf32>
    %318 = arith.addf %316, %317 : vector<8x32xf32>
    %c1_118 = arith.constant 1 : index
    %c0_119 = arith.constant 0 : index
    %c0_120 = arith.constant 0 : index
    %319 = vector.load %arg13[%c1_118, %c0_119, %c0_120] : memref<2x8x32xf32, #tpu.memory_space<vmem>>, vector<1x8x32xf32>
    %320 = vector.shape_cast %319 : vector<1x8x32xf32> to vector<8x32xf32>
    %321 = vector.shape_cast %318 : vector<8x32xf32> to vector<1x8x32xf32>
    tpu.vector_store %arg13[%c1_118, %c0_119, %c0_120], %321 {strides = array<i32>} : memref<2x8x32xf32, #tpu.memory_space<vmem>>, vector<1x8x32xf32>,
    return
  }
  func.func @transform_0(%arg0: i32) -> (i32, i32, i32) {
    %c0_i32 = arith.constant 0 : i32
    %c0_i32_0 = arith.constant 0 : i32
    %c0_i32_1 = arith.constant 0 : i32
    return %arg0, %c0_i32, %c0_i32_0 : i32, i32, i32
  }
  func.func @transform_1(%arg0: i32) -> (i32, i32, i32) {
    %c0_i32 = arith.constant 0 : i32
    %c0_i32_0 = arith.constant 0 : i32
    %c0_i32_1 = arith.constant 0 : i32
    return %arg0, %c0_i32, %c0_i32_0 : i32, i32, i32
  }
  func.func @transform_2(%arg0: i32) -> (i32, i32, i32) {
    %c0_i32 = arith.constant 0 : i32
    %c0_i32_0 = arith.constant 0 : i32
    %c0_i32_1 = arith.constant 0 : i32
    return %arg0, %c0_i32, %c0_i32_0 : i32, i32, i32
  }
  func.func @transform_3(%arg0: i32) -> (i32, i32, i32) {
    %c0_i32 = arith.constant 0 : i32
    %c0_i32_0 = arith.constant 0 : i32
    %c0_i32_1 = arith.constant 0 : i32
    return %arg0, %c0_i32, %c0_i32_0 : i32, i32, i32
  }
  func.func @transform_4(%arg0: i32) -> (i32, i32) {
    %c0_i32 = arith.constant 0 : i32
    %c0_i32_0 = arith.constant 0 : i32
    %c0_i32_1 = arith.constant 0 : i32
    return %c0_i32, %c0_i32_0 : i32, i32
  }
  func.func @transform_5(%arg0: i32) -> (i32, i32) {
    %c0_i32 = arith.constant 0 : i32
    %c0_i32_0 = arith.constant 0 : i32
    %c0_i32_1 = arith.constant 0 : i32
    return %c0_i32, %c0_i32_0 : i32, i32
  }
  func.func @transform_6(%arg0: i32) -> (i32, i32) {
    %c0_i32 = arith.constant 0 : i32
    %c0_i32_0 = arith.constant 0 : i32
    %c0_i32_1 = arith.constant 0 : i32
    return %c0_i32, %c0_i32_0 : i32, i32
  }
  func.func @transform_7(%arg0: i32) -> (i32, i32) {
    %c0_i32 = arith.constant 0 : i32
    %c0_i32_0 = arith.constant 0 : i32
    %c0_i32_1 = arith.constant 0 : i32
    return %c0_i32, %c0_i32_0 : i32, i32
  }
  func.func @transform_8(%arg0: i32) -> (i32, i32) {
    %c0_i32 = arith.constant 0 : i32
    %c0_i32_0 = arith.constant 0 : i32
    %c0_i32_1 = arith.constant 0 : i32
    return %c0_i32, %c0_i32_0 : i32, i32
  }
  func.func @transform_9(%arg0: i32) -> (i32, i32) {
    %c0_i32 = arith.constant 0 : i32
    %c0_i32_0 = arith.constant 0 : i32
    %c0_i32_1 = arith.constant 0 : i32
    return %c0_i32, %c0_i32_0 : i32, i32
  }
  func.func @transform_10(%arg0: i32) -> (i32, i32) {
    %c0_i32 = arith.constant 0 : i32
    %c0_i32_0 = arith.constant 0 : i32
    %c0_i32_1 = arith.constant 0 : i32
    return %c0_i32, %c0_i32_0 : i32, i32
  }
  func.func @transform_11(%arg0: i32) -> (i32, i32) {
    %c0_i32 = arith.constant 0 : i32
    %c0_i32_0 = arith.constant 0 : i32
    %c0_i32_1 = arith.constant 0 : i32
    return %c0_i32, %c0_i32_0 : i32, i32
  }
  func.func @transform_12(%arg0: i32) -> (i32, i32, i32) {
    %c0_i32 = arith.constant 0 : i32
    %c0_i32_0 = arith.constant 0 : i32
    %c0_i32_1 = arith.constant 0 : i32
    return %arg0, %c0_i32, %c0_i32_0 : i32, i32, i32
  }
}

</mosaic_0001>

<bundles_post_ra>
// kernel: tpu_custom_call.1
= control target key start
LH: loop header
LB: loop body
LE: loop exit
PB: predicated region body
PF: predicated region fallthrough
CT: control target
= control target key end

     0   :  { %17 = vsyncpa [#allocation3], 0  ;;  %s4849_s0 = inlined_call_operand.hbm [shape: f32[2,8,32], index: 0, kind: input, shape index: {}]   ;;  %s4850_s1 = inlined_call_operand.hbm [shape: f32[2,8,32], index: 1, kind: input, shape index: {}]   ;;  %s4851_s2 = inlined_call_operand.hbm [shape: f32[2,8,32], index: 2, kind: input, shape index: {}]   ;;  %s4852_s3 = inlined_call_operand.hbm [shape: f32[2,8,8], index: 3, kind: input, shape index: {}]   ;;  %s4853_s4 = inlined_call_operand.hbm [shape: f32[32,32], index: 4, kind: input, shape index: {}]   ;;  %s4854_s5 = inlined_call_operand.vmem [shape: f32[1,32], index: 5, kind: input, shape index: {}]   ;;  %s4855_s6 = inlined_call_operand.hbm [shape: f32[32,32], index: 6, kind: input, shape index: {}]   ;;  %s4856_s7 = inlined_call_operand.vmem [shape: f32[1,32], index: 7, kind: input, shape index: {}]   ;;  %s4857_s8 = inlined_call_operand.hbm [shape: f32[32,32], index: 8, kind: input, shape index: {}]   ;;  %s4858_s9 = inlined_call_operand.vmem [shape: f32[1,32], index: 9, kind: input, shape index: {}]   ;;  %s4859_s10 = inlined_call_operand.hbm [shape: f32[32,32], index: 10, kind: input, shape index: {}]   ;;  %s4860_s11 = inlined_call_operand.vmem [shape: f32[1,32], index: 11, kind: input, shape index: {}]   ;;  %s4861_s12 = inlined_call_operand.hbm [shape: f32[2,8,32], index: 12, kind: output, shape index: {}]  }
   0x1   :  { %18 = vsyncpa [#allocation6], 0 }
   0x2   :  { %19 = vsyncpa [#allocation9], 0 }
   0x3   :  { %20 = vsyncpa [#allocation12], 0 }
   0x4   :  { %21 = vsyncpa [#allocation15], 0 }
   0x5   :  { %22 = vsyncpa [#allocation4], 0  ;;  %s4223_s21 = smov [#allocation5]   ;;  %s4224_s23 = smov [#allocation8]  }
   0x6   :  { %s40_s22 = sshll.u32 %s4223_s21, 4  ;;  %s64_s24 = sshll.u32 %s4224_s23, 4  ;;  %s41_s22 = int_to_ptr.vmem [resolvable:$true] %s40_s22  ;;  %s65_s24 = int_to_ptr.vmem [resolvable:$true] %s64_s24 }
   0x7   :  { %s4039_s25 = scalar_lea.vmem %s41_s22, 256  ;;  %p4044_p1 = scmp.lt.s32.totalorder %s41_s22, %s41_s22 }
   0x8   :  { %p4040_p0 = scmp.ne.s32.totalorder %s41_s22, %s4039_s25  ;;  %p4045_p2 = scmp.lt.s32.totalorder %s4039_s25, %s4039_s25 }
   0xa   :  { %p4046_p3 = por %p4045_p2, %p4044_p1 }
   0xc   :  { %p4047_p4 = pnand %p4046_p3, %p4040_p0 }
   0xe   :  { %4050 = shalt.err (!%p4047_p4)
}
   0xf   :  { %s4225_s26 = smov 128   ;;  %s4226_s27 = smov 8  }
  0x10   :  { %46 = dma.hbm_to_vmem [thread:$0]  %s4850_s1, 256, %s41_s22, [#allocation6], %s4225_s26, %s4225_s26, %s4226_s27  }
  0x11   :  { %s4059_s30 = scalar_lea.vmem %s65_s24, 256  ;;  %p4064_p6 = scmp.lt.s32.totalorder %s65_s24, %s65_s24 }
  0x12   :  { %p4060_p5 = scmp.ne.s32.totalorder %s65_s24, %s4059_s30  ;;  %p4065_p7 = scmp.lt.s32.totalorder %s4059_s30, %s4059_s30 }
  0x14   :  { %p4066_p8 = por %p4065_p7, %p4064_p6 }
  0x16   :  { %p4067_p9 = pnand %p4066_p8, %p4060_p5 }
  0x18   :  { %4070 = shalt.err (!%p4067_p9)
}
  0x19   :  { %70 = dma.hbm_to_vmem [thread:$0]  %s4852_s3, 256, %s65_s24, [#allocation9], %s4225_s26, %s4225_s26, %s4226_s27  }
  0x1a   :  { %s4227_s15 = smov [#allocation11]   ;;  %s4228_s17 = smov [#allocation2]  }
  0x1b   :  { %s90_s16 = sshll.u32 %s4227_s15, 4  ;;  %s28_s18 = sshll.u32 %s4228_s17, 4  ;;  %s91_s16 = int_to_ptr.vmem [resolvable:$true] %s90_s16  ;;  %s29_s18 = int_to_ptr.vmem [resolvable:$true] %s28_s18 }
  0x1c   :  { %s4079_s1 = scalar_lea.vmem %s91_s16, 512  ;;  %p4084_p11 = scmp.lt.s32.totalorder %s91_s16, %s91_s16 }
  0x1d   :  { %p4080_p10 = scmp.ne.s32.totalorder %s91_s16, %s4079_s1  ;;  %p4085_p12 = scmp.lt.s32.totalorder %s4079_s1, %s4079_s1 }
  0x1f   :  { %p4086_p13 = por %p4085_p12, %p4084_p11 }
  0x21   :  { %p4087_p0 = pnand %p4086_p13, %p4080_p10 }
  0x23   :  { %4090 = shalt.err (!%p4087_p0)
}
  0x24   :  { %96 = dma.hbm_to_vmem [thread:$0]  %s4855_s6, 512, %s91_s16, [#allocation12], %s4225_s26, %s4225_s26, %s4226_s27  }
  0x25   :  { %s4099_s3 = scalar_lea.vmem %s29_s18, 256  ;;  %p4104_p2 = scmp.lt.s32.totalorder %s29_s18, %s29_s18 }
  0x26   :  { %p4100_p1 = scmp.ne.s32.totalorder %s29_s18, %s4099_s3  ;;  %p4105_p3 = scmp.lt.s32.totalorder %s4099_s3, %s4099_s3 }
  0x28   :  { %p4106_p4 = por %p4105_p3, %p4104_p2 }
  0x2a   :  { %p4107_p5 = pnand %p4106_p4, %p4100_p1 }
  0x2c   :  { %4110 = shalt.err (!%p4107_p5)
}
  0x2d   :  { %34 = dma.hbm_to_vmem [thread:$0]  %s4849_s0, 256, %s29_s18, [#allocation3], %s4225_s26, %s4225_s26, %s4226_s27  }
  0x2e   :  { %s4229_s23 = smov [#allocation7]   ;;  %s4230_s25 = smov [#allocation10]  }
  0x2f   :  { %s52_s24 = sshll.u32 %s4229_s23, 4  ;;  %s76_s28 = sshll.u32 %s4230_s25, 4  ;;  %s53_s24 = int_to_ptr.vmem [resolvable:$true] %s52_s24  ;;  %s77_s28 = int_to_ptr.vmem [resolvable:$true] %s76_s28 }
  0x30   :  { %s4119_s6 = scalar_lea.vmem %s53_s24, 256  ;;  %p4124_p7 = scmp.lt.s32.totalorder %s53_s24, %s53_s24 }
  0x31   :  { %p4120_p6 = scmp.ne.s32.totalorder %s53_s24, %s4119_s6  ;;  %p4125_p8 = scmp.lt.s32.totalorder %s4119_s6, %s4119_s6 }
  0x33   :  { %p4126_p9 = por %p4125_p8, %p4124_p7 }
  0x35   :  { %p4127_p10 = pnand %p4126_p9, %p4120_p6 }
  0x37   :  { %4130 = shalt.err (!%p4127_p10)
}
  0x38   :  { %58 = dma.hbm_to_vmem [thread:$0]  %s4851_s2, 256, %s53_s24, [#allocation6], %s4225_s26, %s4225_s26, %s4226_s27  }
  0x39   :  { %s4139_s0 = scalar_lea.vmem %s77_s28, 512  ;;  %p4144_p12 = scmp.lt.s32.totalorder %s77_s28, %s77_s28 }
  0x3a   :  { %p4140_p11 = scmp.ne.s32.totalorder %s77_s28, %s4139_s0  ;;  %p4145_p13 = scmp.lt.s32.totalorder %s4139_s0, %s4139_s0 }
  0x3c   :  { %p4146_p0 = por %p4145_p13, %p4144_p12 }
  0x3e   :  { %p4147_p1 = pnand %p4146_p0, %p4140_p11 }
  0x40   :  { %4150 = shalt.err (!%p4147_p1)
}
  0x41   :  { %82 = dma.hbm_to_vmem [thread:$0]  %s4853_s4, 512, %s77_s28, [#allocation9], %s4225_s26, %s4225_s26, %s4226_s27  }
  0x42   :  { %s4231_s15 = smov [#allocation13]   ;;  %s4232_s17 = smov [#allocation14]  }
  0x43   :  { %s104_s16 = sshll.u32 %s4231_s15, 4  ;;  %s118_s18 = sshll.u32 %s4232_s17, 4  ;;  %s105_s16 = int_to_ptr.vmem [resolvable:$true] %s104_s16  ;;  %s119_s18 = int_to_ptr.vmem [resolvable:$true] %s118_s18 }
  0x44   :  { %s4159_s2 = scalar_lea.vmem %s105_s16, 512  ;;  %p4164_p3 = scmp.lt.s32.totalorder %s105_s16, %s105_s16 }
  0x45   :  { %p4160_p2 = scmp.ne.s32.totalorder %s105_s16, %s4159_s2  ;;  %p4165_p4 = scmp.lt.s32.totalorder %s4159_s2, %s4159_s2 }
  0x47   :  { %p4166_p5 = por %p4165_p4, %p4164_p3 }
  0x49   :  { %p4167_p6 = pnand %p4166_p5, %p4160_p2 }
  0x4b   :  { %4170 = shalt.err (!%p4167_p6)
}
  0x4c   :  { %110 = dma.hbm_to_vmem [thread:$0]  %s4857_s8, 512, %s105_s16, [#allocation12], %s4225_s26, %s4225_s26, %s4226_s27  }
  0x4d   :  { %s4179_s4 = scalar_lea.vmem %s119_s18, 512  ;;  %p4184_p8 = scmp.lt.s32.totalorder %s119_s18, %s119_s18 }
  0x4e   :  { %p4180_p7 = scmp.ne.s32.totalorder %s119_s18, %s4179_s4  ;;  %p4185_p9 = scmp.lt.s32.totalorder %s4179_s4, %s4179_s4 }
  0x50   :  { %p4186_p10 = por %p4185_p9, %p4184_p8 }
  0x52   :  { %p4187_p11 = pnand %p4186_p10, %p4180_p7 }
  0x54   :  { %4190 = shalt.err (!%p4187_p11)
}
  0x55   :  { %124 = dma.hbm_to_vmem [thread:$0]  %s4859_s10, 512, %s119_s18, [#allocation15], %s4225_s26, %s4225_s26, %s4226_s27  }
  0x56   :  { %4211 = dma.done.wait [#allocation3], 256  }
  0x57   :  { %4212 = vsyncadd [#allocation3], 4294967040 }
  0x58   :  { %4213 = dma.done.wait [#allocation6], 512  }
  0x59   :  { %4214 = vsyncadd [#allocation6], 4294966784 }
  0x5a   :  { %4215 = dma.done.wait [#allocation9], 768  }
  0x5b   :  { %4216 = vsyncadd [#allocation9], 4294966528 }
  0x5c   :  { %4217 = dma.done.wait [#allocation12], 1024  }
  0x5d   :  { %4218 = vsyncadd [#allocation12], 4294966272 }
  0x5e   :  { %4219 = dma.done.wait [#allocation15], 512  }
  0x5f   :  { %4220 = vsyncadd [#allocation15], 4294966784  ;;  %v4233_v0 = vmov 0.0   ;;  %vm4234_vm0 = vmmov 0   ;;  %v4368_v1 = vld [vmem:[#allocation10 + $0x18] sm:$0xff]  ;;  %v4372_v3 = vld [vmem:[#allocation10 + $0x10] sm:$0xff] }
  0x60   :  { %3704 = vmatprep.subr.mxu1 %v4233_v0  ;;  %3693 = vmatprep.subr.mxu0 %v4233_v0  ;;  %v4370_v2 = vld [vmem:[#allocation13 + $0x18] sm:$0xff]  ;;  %v4376_v4 = vld [vmem:[#allocation13 + $0x10] sm:$0xff]  ;;  %v4380_v5 = vld [vmem:[#allocation10 + $0x8] sm:$0xff]  ;;  %vm181_vm1 = vcmask 261120   ;;  %vm415_vm2 = vcmask 31744   ;;  %s4235_s23 = smov 124  }
  0x61   :  { %3712 = vmatprep.mubr.msk.f32.mxu1 %vm4234_vm0, %v4233_v0  ;;  %3701 = vmatprep.mubr.msk.f32.mxu0 %vm4234_vm0, %v4233_v0  ;;  %v4382_v6 = vld [vmem:[#allocation13 + $0x8] sm:$0xff]  ;;  %v4388_v7 = vld [vmem:[#allocation10] sm:$0xff]  ;;  %s4238_s24 = smov 112   ;;  %s4239_s25 = smov 108   ;;  %v4440_v19 = vld [vmem:[#allocation11 + $0x18] sm:$0xff]  ;;  %vm492_vm4 = vcmask 64512  }
  0x62   :  { %3705 = vmatpush3.msra.mxu1 %v4368_v1  ;;  %3694 = vmatpush3.msra.mxu0 %v4370_v2  ;;  %v4390_v8 = vld [vmem:[#allocation13] sm:$0xff]  ;;  %s4240_s28 = smov 104   ;;  %s4241_s6 = smov 100   ;;  %v4442_v20 = vld [vmem:[#allocation11 + $0x10] sm:$0xff]  ;;  %v4446_v21 = vld [vmem:[#allocation11 + $0x8] sm:$0xff]  ;;  %vm1763_vm5 = vcmask 97280  }
  0x63   :  { %3706 = vmatprep.subr.mxu1 %v4233_v0  ;;  %3695 = vmatprep.subr.mxu0 %v4233_v0  ;;  %v171_v9 = vld [vmem:[#allocation2] sm:$0xff]  ;;  %v172_v23 = vld [vmem:[#allocation5] sm:$0xff]  ;;  %s4243_s0 = smov 12   ;;  %s4244_s13 = smov 16   ;;  %vm1765_vm6 = vcmask 130048   ;;  %vm1767_vm7 = vcmask 162816  }
  0x64   :  { %3707 = vmatpush3.msra.mxu1 %v4372_v3  ;;  %3696 = vmatpush3.msra.mxu0 %v4376_v4  ;;  %v173_v10 = vld [vmem:[#allocation7] sm:$0xff]  ;;  %v174_v24 = vld [vmem:[#allocation8] sm:$0xff]  ;;  %s4245_s14 = smov 20   ;;  %s4246_s15 = smov 24   ;;  %vm1769_vm8 = vcmask 195584   ;;  %vm1771_vm9 = vcmask 228352  }
  0x65   :  { %3708 = vmatprep.subr.mxu1 %v4233_v0  ;;  %3697 = vmatprep.subr.mxu0 %v4233_v0  ;;  %v4409_v11 = vld [vmem:[%s4854_s5] ss:$0 sm:$0xff]  ;;  %s4236_s5 = smov 120   ;;  %vm413_vm3 = vcmp.eq.f32.partialorder %v174_v24, 0.0  ;;  %s4247_s16 = smov 28  }
  0x66   :  { %3709 = vmatpush3.msra.mxu1 %v4380_v5  ;;  %3698 = vmatpush3.msra.mxu0 %v4382_v6  ;;  %v4414_v12 = vld [vmem:[%s4858_s9] ss:$0 sm:$0xff]  ;;  %s4237_s9 = smov 116   ;;  %v4460_v25 = vsel %vm413_vm3, -1e+09, %v4233_v0 }
  0x67   :  { %3710 = vmatprep.subr.mxu1 %v4233_v0  ;;  %3699 = vmatprep.subr.mxu0 %v4233_v0  ;;  %v4450_v22 = vld [vmem:[#allocation11] sm:$0xff] }
  0x68   :  { %3711 = vmatpush3.msra.mxu1 %v4388_v7  ;;  %3700 = vmatpush3.msra.mxu0 %v4390_v8  ;;  %v4468_v35 = vld [vmem:[%s4856_s7] ss:$0 sm:$0xff]  ;;  %s4242_s7 = smov 4  }
  0x69   :  { %3713 = vmatmul.mubr.msk.f32.vlgmr.msra.gmra.mxu1 %vm181_vm1, %v171_v9  ;;  %3702 = vmatmul.mubr.msk.f32.vlgmr.msra.gmra.mxu0 %vm181_vm1, %v173_v10 }
  0x6a   :  { %3726 = vmatprep.subr.mxu1 %v4233_v0  ;;  %3728 = vmatprep.mubr.msk.f32.mxu1 %vm4234_vm0, %v4233_v0 }
  0x6b   :  { %3715 = vmatprep.subr.mxu0 %v4233_v0  ;;  %3723 = vmatprep.mubr.msk.f32.mxu0 %vm4234_vm0, %v4233_v0 }
  0x6c   :  { %3716 = vmatpush3.msra.mxu0 %v4440_v19 }
  0x6d   :  { %3717 = vmatprep.subr.mxu0 %v4233_v0 }
  0x6e   :  { %3718 = vmatpush3.msra.mxu0 %v4442_v20 }
  0x6f   :  { %3719 = vmatprep.subr.mxu0 %v4233_v0 }
  0x70   :  { %3720 = vmatpush3.msra.mxu0 %v4446_v21 }
  0x71   :  { %3721 = vmatprep.subr.mxu0 %v4233_v0 }
  0x72   :  { %3722 = vmatpush3.msra.mxu0 %v4450_v22 }
  0x73   :  { %3724 = vmatmul.mubr.msk.f32.vlgmr.msra.gmra.mxu0 %vm181_vm1, %v172_v23  ;;  %3746 = vmatprep.subr.mxu0 %v4233_v0 }
  0x74   :  { %3748 = vmatprep.mubr.msk.f32.mxu0 %vm4234_vm0, %v4233_v0 }
 0x129   :  { %v330_v13 = vpop.f32.mrf.mxu1  ;;  %v251_v14 = vpop.f32.mrf.mxu0 }
 0x12a   :  { %v331_v15 = vadd.f32 %v4409_v11, %v330_v13  ;;  %v4418_v16 = vadd.f32 %v4414_v12, %v251_v14 }
 0x12b   :  { %v3714_v17 = vpop.f32.mrf.mxu1  ;;  %v3703_v18 = vpop.f32.mrf.mxu0 }
 0x12c   :  { %579 = vrot.lane.b32.xlu1 %v331_v15, %s4235_s23  ;;  %3727 = vmatpush3.xpose.msk.msra.mxu1 %vm415_vm2, %v331_v15 }
 0x12d   :  { %3731 = vmatprep.subr.mxu1 %v4233_v0 }
 0x12f   :  { %3729 = vmatmul.mubr.msk.f32.vlgmr.msra.gmra.mxu1 %vm415_vm2, %v4418_v16 }
 0x130   :  { %577 = vrot.lane.b32.xlu1 %v4418_v16, %s4235_s23  ;;  %3733 = vmatprep.mubr.msk.f32.mxu1 %vm4234_vm0, %v4233_v0 }
 0x133   :  { %v409_v36 = vpop.f32.mrf.mxu0 }
 0x134   :  { %743 = vrot.lane.b32.xlu1 %v4418_v16, %s4236_s5  ;;  %v4471_v37 = vadd.f32 %v4468_v35, %v409_v36 }
 0x135   :  { %v3725_v38 = vpop.f32.mrf.mxu0 }
 0x136   :  { %3732 = vmatpush3.msra.mxu1 %v4471_v37 }
 0x137   :  { %3736 = vmatprep.subr.mxu1 %v4233_v0 }
 0x138   :  { %910 = vrot.lane.b32.xlu1 %v331_v15, %s4237_s9 }
 0x13c   :  { %908 = vrot.lane.b32.xlu1 %v4418_v16, %s4237_s9 }
 0x140   :  { %1075 = vrot.lane.b32.xlu1 %v331_v15, %s4238_s24 }
 0x144   :  { %1073 = vrot.lane.b32.xlu1 %v4418_v16, %s4238_s24 }
 0x148   :  { %1240 = vrot.lane.b32.xlu1 %v331_v15, %s4239_s25 }
 0x14c   :  { %1405 = vrot.lane.b32.xlu1 %v331_v15, %s4240_s28 }
 0x150   :  { %1570 = vrot.lane.b32.xlu1 %v331_v15, %s4241_s6 }
 0x19e   :  { %v580_v39 = vpop.permute.xlu1 %579 }
 0x1a2   :  { %v578_v40 = vpop.permute.xlu1 %577 }
 0x1a6   :  { %v744_v41 = vpop.permute.xlu1 %743 }
 0x1aa   :  { %v911_v42 = vpop.permute.xlu1 %910 }
 0x1ae   :  { %v909_v43 = vpop.permute.xlu1 %908 }
 0x1b2   :  { %v1076_v44 = vpop.permute.xlu1 %1075 }
 0x1b6   :  { %v1074_v47 = vpop.permute.xlu1 %1073 }
 0x1ba   :  { %v1241_v48 = vpop.permute.xlu1 %1240 }
 0x1be   :  { %v1406_v52 = vpop.permute.xlu1 %1405 }
 0x1c2   :  { %v1571_v54 = vpop.permute.xlu1 %1570 }
 0x1ef   :  { %v488_v26 = vpop.f32.mrf.mxu1 }
 0x1f0   :  { %v489_v27 = vadd.f32 %v488_v26, %v4460_v25 }
 0x1f1   :  { %v3730_v28 = vpop.f32.mrf.mxu1 }
 0x1f2   :  { %v493_v29 = vsel %vm492_vm4, %v489_v27, -inf }
 0x1f3   :  { %494 = vmax.xlane.f32.xlu0 %v493_v29 }
 0x27c   :  { %v495_v30 = vpop.xlane.xlu0 %494 }
 0x27d   :  { %v496_v31 = vsub.f32 %v489_v27, %v495_v30 }
 0x27f   :  { %v497_v32 = vmul.f32 1.442695, %v496_v31 }
 0x281   :  { %3967 = vpow2.f32 %v497_v32 }
 0x28e   :  { %v3968_v33 = vpop.eup %3967 }
 0x28f   :  { %v499_v34 = vsel %vm492_vm4, %v3968_v33, 0.0 }
 0x290   :  { %500 = vadd.xlane.f32.xlu0 %v499_v34 }
 0x2a6   :  { %745 = vrot.lane.b32.xlu0 %v331_v15, %s4236_s5 }
 0x2aa   :  { %1238 = vrot.lane.b32.xlu0 %v4418_v16, %s4239_s25 }
 0x2ae   :  { %1403 = vrot.lane.b32.xlu0 %v4418_v16, %s4240_s28 }
 0x2b2   :  { %1568 = vrot.lane.b32.xlu0 %v4418_v16, %s4241_s6 }
 0x319   :  { %v501_v45 = vpop.xlane.xlu0 %500 }
 0x31a   :  { %3969 = vrcp.f32 %v501_v45 }
 0x31d   :  { %v746_v46 = vpop.permute.xlu0 %745 }
 0x31e   :  { %3747 = vmatpush3.xpose.msk.msra.mxu0 %vm415_vm2, %v746_v46 }
 0x31f   :  { %3756 = vmatprep.subr.mxu0 %v4233_v0 }
 0x321   :  { %3749 = vmatmul.mubr.msk.f32.vlgmr.msra.gmra.mxu0 %vm415_vm2, %v744_v41  ;;  %v1239_v50 = vpop.permute.xlu0 %1238 }
 0x322   :  { %3757 = vmatpush3.xpose.msk.msra.mxu0 %vm415_vm2, %v911_v42  ;;  %3758 = vmatprep.mubr.msk.f32.mxu0 %vm4234_vm0, %v4233_v0 }
 0x323   :  { %3766 = vmatprep.subr.mxu0 %v4233_v0 }
 0x325   :  { %3759 = vmatmul.mubr.msk.f32.vlgmr.msra.gmra.mxu0 %vm415_vm2, %v909_v43  ;;  %v1404_v53 = vpop.permute.xlu0 %1403 }
 0x326   :  { %3767 = vmatpush3.xpose.msk.msra.mxu0 %vm415_vm2, %v1076_v44  ;;  %3768 = vmatprep.mubr.msk.f32.mxu0 %vm4234_vm0, %v4233_v0 }
 0x327   :  { %v3970_v49 = vpop.eup %3969  ;;  %3776 = vmatprep.subr.mxu0 %v4233_v0 }
 0x328   :  { %v503_v51 = vmul.f32 %v3970_v49, %v3968_v33 }
 0x329   :  { %3769 = vmatmul.mubr.msk.f32.vlgmr.msra.gmra.mxu0 %vm415_vm2, %v1074_v47  ;;  %v1569_v55 = vpop.permute.xlu0 %1568 }
 0x32a   :  { %3734 = vmatmul.mubr.msk.f32.vlgmr.msra.gmra.mxu1 %vm492_vm4, %v503_v51  ;;  %3777 = vmatpush3.xpose.msk.msra.mxu0 %vm415_vm2, %v1241_v48 }
 0x32b   :  { %3737 = vmatpush3.xpose.msk.msra.mxu1 %vm415_vm2, %v580_v39  ;;  %3778 = vmatprep.mubr.msk.f32.mxu0 %vm4234_vm0, %v4233_v0 }
 0x32c   :  { %3738 = vmatprep.mubr.msk.f32.mxu1 %vm4234_vm0, %v4233_v0  ;;  %3786 = vmatprep.subr.mxu0 %v4233_v0 }
 0x32d   :  { %3779 = vmatmul.mubr.msk.f32.vlgmr.msra.gmra.mxu0 %vm415_vm2, %v1239_v50  ;;  %3741 = vmatprep.subr.mxu1 %v4233_v0 }
 0x32e   :  { %3739 = vmatmul.mubr.msk.f32.vlgmr.msra.gmra.mxu1 %vm415_vm2, %v578_v40  ;;  %3787 = vmatpush3.xpose.msk.msra.mxu0 %vm415_vm2, %v1406_v52 }
 0x32f   :  { %3788 = vmatprep.mubr.msk.f32.mxu0 %vm4234_vm0, %v4233_v0  ;;  %3796 = vmatprep.subr.mxu0 %v4233_v0 }
 0x330   :  { %3743 = vmatprep.mubr.msk.f32.mxu1 %vm4234_vm0, %v4233_v0 }
 0x331   :  { %3789 = vmatmul.mubr.msk.f32.vlgmr.msra.gmra.mxu0 %vm415_vm2, %v1404_v53 }
 0x332   :  { %3797 = vmatpush3.xpose.msk.msra.mxu0 %vm415_vm2, %v1571_v54  ;;  %3798 = vmatprep.mubr.msk.f32.mxu0 %vm4234_vm0, %v4233_v0 }
 0x333   :  { %3806 = vmatprep.subr.mxu0 %v4233_v0 }
 0x335   :  { %3799 = vmatmul.mubr.msk.f32.vlgmr.msra.gmra.mxu0 %vm415_vm2, %v1569_v55 }
 0x336   :  { %3814 = vmatprep.mubr.msk.f32.mxu0 %vm4234_vm0, %v4233_v0 }
 0x3e1   :  { %v817_v56 = vpop.f32.mrf.mxu0 }
 0x3e2   :  { %v818_v57 = vadd.f32 %v817_v56, %v4460_v25 }
 0x3e3   :  { %v3750_v58 = vpop.f32.mrf.mxu0 }
 0x3e4   :  { %v821_v59 = vsel %vm492_vm4, %v818_v57, -inf }
 0x3e5   :  { %822 = vmax.xlane.f32.xlu0 %v821_v59  ;;  %v982_v60 = vpop.f32.mrf.mxu0 }
 0x3e6   :  { %v983_v61 = vadd.f32 %v982_v60, %v4460_v25 }
 0x3e7   :  { %v3760_v62 = vpop.f32.mrf.mxu0 }
 0x3e8   :  { %v986_v63 = vsel %vm492_vm4, %v983_v61, -inf }
 0x3e9   :  { %987 = vmax.xlane.f32.xlu0 %v986_v63  ;;  %v1147_v9 = vpop.f32.mrf.mxu0 }
 0x3ea   :  { %v4524_v10 = vpop.f32.mrf.mxu1  ;;  %v1148_v27 = vadd.f32 %v1147_v9, %v4460_v25 }
 0x3eb   :  { %v3770_v13 = vpop.f32.mrf.mxu0 }
 0x3ec   :  { %v3735_v14 = vpop.f32.mrf.mxu1  ;;  %v1151_v33 = vsel %vm492_vm4, %v1148_v27, -inf }
 0x3ed   :  { %v1312_v15 = vpop.f32.mrf.mxu0 }
 0x3ee   :  { %v1313_v16 = vadd.f32 %v1312_v15, %v4460_v25  ;;  %v651_v17 = vpop.f32.mrf.mxu1 }
 0x3ef   :  { %v4528_v18 = vadd.f32 %v651_v17, %v4460_v25  ;;  %v3780_v23 = vpop.f32.mrf.mxu0 }
 0x3f0   :  { %v3740_v24 = vpop.f32.mrf.mxu1  ;;  %v1316_v26 = vsel %vm492_vm4, %v1313_v16, -inf }
 0x3f1   :  { %1317 = vmax.xlane.f32.xlu0 %v1316_v26  ;;  %v1477_v28 = vpop.f32.mrf.mxu0  ;;  %v655_v29 = vsel %vm492_vm4, %v4528_v18, -inf }
 0x3f2   :  { %656 = vmax.xlane.f32.xlu1 %v655_v29  ;;  %v1478_v31 = vadd.f32 %v1477_v28, %v4460_v25 }
 0x3f3   :  { %v3790_v30 = vpop.f32.mrf.mxu0 }
 0x3f4   :  { %v1481_v39 = vsel %vm492_vm4, %v1478_v31, -inf }
 0x3f5   :  { %v1642_v32 = vpop.f32.mrf.mxu0 }
 0x3f6   :  { %v1643_v34 = vadd.f32 %v1642_v32, %v4460_v25  ;;  %1152 = vmax.xlane.f32.xlu1 %v1151_v33 }
 0x3f7   :  { %v3800_v36 = vpop.f32.mrf.mxu0 }
 0x3f8   :  { %v1646_v38 = vsel %vm492_vm4, %v1643_v34, -inf }
 0x3f9   :  { %1647 = vmax.xlane.f32.xlu0 %v1646_v38 }
 0x3fa   :  { %1482 = vmax.xlane.f32.xlu1 %v1481_v39 }
 0x46e   :  { %v823_v40 = vpop.xlane.xlu0 %822 }
 0x46f   :  { %v824_v41 = vsub.f32 %v818_v57, %v823_v40 }
 0x471   :  { %v825_v42 = vmul.f32 1.442695, %v824_v41 }
 0x472   :  { %v988_v43 = vpop.xlane.xlu0 %987 }
 0x473   :  { %3971 = vpow2.f32 %v825_v42  ;;  %v989_v44 = vsub.f32 %v983_v61, %v988_v43 }
 0x475   :  { %v990_v45 = vmul.f32 1.442695, %v989_v44 }
 0x477   :  { %3973 = vpow2.f32 %v990_v45 }
 0x47a   :  { %v1318_v46 = vpop.xlane.xlu0 %1317 }
 0x47b   :  { %v1319_v47 = vsub.f32 %v1313_v16, %v1318_v46  ;;  %v657_v48 = vpop.xlane.xlu1 %656 }
 0x47c   :  { %v658_v23 = vsub.f32 %v4528_v18, %v657_v48 }
 0x47d   :  { %v1320_v25 = vmul.f32 1.442695, %v1319_v47 }
 0x47e   :  { %v659_v24 = vmul.f32 1.442695, %v658_v23 }
 0x47f   :  { %3975 = vpow2.f32 %v1320_v25  ;;  %v1153_v49 = vpop.xlane.xlu1 %1152 }
 0x480   :  { %v4539_v50 = vpop.eup %3971  ;;  %v1154_v51 = vsub.f32 %v1148_v27, %v1153_v49 }
 0x481   :  { %v827_v52 = vsel %vm492_vm4, %v4539_v50, 0.0 }
 0x482   :  { %v1155_v53 = vmul.f32 1.442695, %v1154_v51  ;;  %828 = vadd.xlane.f32.xlu0 %v827_v52  ;;  %v1648_v54 = vpop.xlane.xlu0 %1647 }
 0x483   :  { %v1649_v55 = vsub.f32 %v1643_v34, %v1648_v54  ;;  %v1483_v56 = vpop.xlane.xlu1 %1482 }
 0x484   :  { %v4543_v57 = vpop.eup %3973  ;;  %3977 = vpow2.f32 %v1155_v53  ;;  %v1484_v58 = vsub.f32 %v1478_v31, %v1483_v56 }
 0x485   :  { %v1650_v59 = vmul.f32 1.442695, %v1649_v55  ;;  %v992_v60 = vsel %vm492_vm4, %v4543_v57, 0.0  ;;  %v1858_v55 = vld [vmem:[#allocation7 + $0x8] sm:$0xff] }
 0x486   :  { %v1485_v61 = vmul.f32 1.442695, %v1484_v58  ;;  %993 = vadd.xlane.f32.xlu1 %v992_v60  ;;  %v4638_v58 = vld [vmem:[#allocation14] sm:$0xff] }
 0x487   :  { %3979 = vpow2.f32 %v1650_v59 }
 0x488   :  { %3981 = vpow2.f32 %v1485_v61 }
 0x489   :  { %3983 = vpow2.f32 %v659_v24 }
 0x48c   :  { %v4547_v62 = vpop.eup %3975 }
 0x48d   :  { %v1322_v63 = vsel %vm492_vm4, %v4547_v62, 0.0 }
 0x48e   :  { %1323 = vadd.xlane.f32.xlu1 %v1322_v63 }
 0x491   :  { %v3978_v9 = vpop.eup %3977 }
 0x492   :  { %v1157_v13 = vsel %vm492_vm4, %v3978_v9, 0.0 }
 0x493   :  { %1158 = vadd.xlane.f32.xlu0 %v1157_v13 }
 0x494   :  { %v4552_v14 = vpop.eup %3979 }
 0x495   :  { %v4554_v15 = vpop.eup %3981  ;;  %v1652_v16 = vsel %vm492_vm4, %v4552_v14, 0.0 }
 0x496   :  { %1653 = vadd.xlane.f32.xlu1 %v1652_v16  ;;  %v1487_v17 = vsel %vm492_vm4, %v4554_v15, 0.0  ;;  %v3984_v26 = vpop.eup %3983 }
 0x497   :  { %1488 = vadd.xlane.f32.xlu0 %v1487_v17  ;;  %v661_v27 = vsel %vm492_vm4, %v3984_v26, 0.0 }
 0x4a7   :  { %832 = vrot.lane.b32.xlu1 %v4471_v37, %s4236_s5 }
 0x4ad   :  { %667 = vrot.lane.b32.xlu0 %v4471_v37, %s4235_s23 }
 0x4b1   :  { %1162 = vrot.lane.b32.xlu0 %v4471_v37, %s4238_s24 }
 0x4b5   :  { %1492 = vrot.lane.b32.xlu0 %v4471_v37, %s4240_s28 }
 0x4cb   :  { %662 = vadd.xlane.f32.xlu1 %v661_v27 }
 0x4dc   :  { %997 = vrot.lane.b32.xlu1 %v4471_v37, %s4237_s9 }
 0x4e0   :  { %1327 = vrot.lane.b32.xlu1 %v4471_v37, %s4239_s25 }
 0x4e4   :  { %1657 = vrot.lane.b32.xlu1 %v4471_v37, %s4241_s6 }
 0x50b   :  { %v829_v28 = vpop.xlane.xlu0 %828 }
 0x50f   :  { %v994_v31 = vpop.xlane.xlu1 %993 }
 0x517   :  { %v1324_v32 = vpop.xlane.xlu1 %1323 }
 0x51c   :  { %v1159_v18 = vpop.xlane.xlu0 %1158 }
 0x51f   :  { %v1654_v33 = vpop.xlane.xlu1 %1653 }
 0x520   :  { %v1489_v29 = vpop.xlane.xlu0 %1488 }
 0x523   :  { %v833_v34 = vpop.permute.xlu1 %832 }
 0x524   :  { %v668_v30 = vpop.permute.xlu0 %667 }
 0x525   :  { %3742 = vmatpush3.msra.mxu1 %v668_v30 }
 0x526   :  { %3751 = vmatprep.subr.mxu1 %v4233_v0 }
 0x528   :  { %v1163_v45 = vpop.permute.xlu0 %1162 }
 0x554   :  { %v663_v36 = vpop.xlane.xlu1 %662 }
 0x555   :  { %3985 = vrcp.f32 %v663_v36 }
 0x556   :  { %3987 = vrcp.f32 %v829_v28 }
 0x557   :  { %3989 = vrcp.f32 %v994_v31 }
 0x558   :  { %3991 = vrcp.f32 %v1159_v18  ;;  %v998_v42 = vpop.permute.xlu1 %997 }
 0x559   :  { %3993 = vrcp.f32 %v1324_v32 }
 0x55a   :  { %3995 = vrcp.f32 %v1489_v29 }
 0x55b   :  { %3997 = vrcp.f32 %v1654_v33 }
 0x55c   :  { %v1328_v48 = vpop.permute.xlu1 %1327 }
 0x560   :  { %v1658_v53 = vpop.permute.xlu1 %1657 }
 0x562   :  { %v3986_v38 = vpop.eup %3985 }
 0x563   :  { %v665_v39 = vmul.f32 %v3986_v38, %v3984_v26  ;;  %v3988_v37 = vpop.eup %3987 }
 0x564   :  { %v831_v40 = vmul.f32 %v3988_v37, %v4539_v50  ;;  %v3990_v41 = vpop.eup %3989  ;;  %v1493_v50 = vpop.permute.xlu0 %1492  ;;  %v1856_v37 = vld [vmem:[#allocation5 + $0x8] sm:$0xff] }
 0x565   :  { %3744 = vmatmul.mubr.msk.f32.vlgmr.msra.gmra.mxu1 %vm492_vm4, %v665_v39  ;;  %v996_v43 = vmul.f32 %v3990_v41, %v4543_v57  ;;  %v3992_v44 = vpop.eup %3991  ;;  %v4636_v57 = vld [vmem:[#allocation14 + $0x8] sm:$0xff] }
 0x566   :  { %3752 = vmatpush3.msra.mxu1 %v833_v34  ;;  %3753 = vmatprep.mubr.msk.f32.mxu1 %vm4234_vm0, %v4233_v0  ;;  %v1161_v46 = vmul.f32 %v3992_v44, %v3978_v9  ;;  %v3994_v47 = vpop.eup %3993 }
 0x567   :  { %3761 = vmatprep.subr.mxu1 %v4233_v0  ;;  %v1326_v25 = vmul.f32 %v3994_v47, %v4547_v62  ;;  %v3996_v49 = vpop.eup %3995 }
 0x568   :  { %v1491_v51 = vmul.f32 %v3996_v49, %v4554_v15  ;;  %v3998_v52 = vpop.eup %3997 }
 0x569   :  { %3754 = vmatmul.mubr.msk.f32.vlgmr.msra.gmra.mxu1 %vm492_vm4, %v831_v40  ;;  %v1656_v54 = vmul.f32 %v3998_v52, %v4552_v14  ;;  %v1860_v52 = vld [vmem:[#allocation8 + $0x8] sm:$0xff] }
 0x56a   :  { %3762 = vmatpush3.msra.mxu1 %v998_v42  ;;  %3763 = vmatprep.mubr.msk.f32.mxu1 %vm4234_vm0, %v4233_v0  ;;  %vm2080_vm10 = vcmp.eq.f32.partialorder %v1860_v52, 0.0 }
 0x56b   :  { %3771 = vmatprep.subr.mxu1 %v4233_v0 }
 0x56d   :  { %3764 = vmatmul.mubr.msk.f32.vlgmr.msra.gmra.mxu1 %vm492_vm4, %v996_v43 }
 0x56e   :  { %3772 = vmatpush3.msra.mxu1 %v1163_v45  ;;  %3773 = vmatprep.mubr.msk.f32.mxu1 %vm4234_vm0, %v4233_v0 }
 0x56f   :  { %3781 = vmatprep.subr.mxu1 %v4233_v0 }
 0x571   :  { %3774 = vmatmul.mubr.msk.f32.vlgmr.msra.gmra.mxu1 %vm492_vm4, %v1161_v46 }
 0x572   :  { %3782 = vmatpush3.msra.mxu1 %v1328_v48  ;;  %3783 = vmatprep.mubr.msk.f32.mxu1 %vm4234_vm0, %v4233_v0 }
 0x573   :  { %3791 = vmatprep.subr.mxu1 %v4233_v0 }
 0x575   :  { %3784 = vmatmul.mubr.msk.f32.vlgmr.msra.gmra.mxu1 %vm492_vm4, %v1326_v25 }
 0x576   :  { %3792 = vmatpush3.msra.mxu1 %v1493_v50  ;;  %3793 = vmatprep.mubr.msk.f32.mxu1 %vm4234_vm0, %v4233_v0 }
 0x577   :  { %3801 = vmatprep.subr.mxu1 %v4233_v0 }
 0x579   :  { %3794 = vmatmul.mubr.msk.f32.vlgmr.msra.gmra.mxu1 %vm492_vm4, %v1491_v51 }
 0x57a   :  { %3802 = vmatpush3.msra.mxu1 %v1658_v53  ;;  %3803 = vmatprep.mubr.msk.f32.mxu1 %vm4234_vm0, %v4233_v0  ;;  %v2081_v53 = vsel %vm2080_vm10, -1e+09, %v4233_v0 }
 0x57b   :  { %3817 = vmatprep.subr.mxu1 %v4233_v0 }
 0x57d   :  { %3804 = vmatmul.mubr.msk.f32.vlgmr.msra.gmra.mxu1 %vm492_vm4, %v1656_v54 }
 0x57e   :  { %3818 = vmatpush3.msra.mxu1 %v4370_v2  ;;  %3825 = vmatprep.mubr.msk.f32.mxu1 %vm4234_vm0, %v4233_v0 }
 0x57f   :  { %3819 = vmatprep.subr.mxu1 %v4233_v0 }
 0x580   :  { %3820 = vmatpush3.msra.mxu1 %v4376_v4 }
 0x581   :  { %3821 = vmatprep.subr.mxu1 %v4233_v0 }
 0x582   :  { %3822 = vmatpush3.msra.mxu1 %v4382_v6  ;;  %v4624_v6 = vld [vmem:[#allocation14 + $0x18] sm:$0xff] }
 0x583   :  { %3823 = vmatprep.subr.mxu1 %v4233_v0  ;;  %3807 = vmatpush3.msra.mxu0 %v4624_v6 }
 0x584   :  { %3824 = vmatpush3.msra.mxu1 %v4390_v8  ;;  %v4626_v8 = vld [vmem:[#allocation14 + $0x10] sm:$0xff]  ;;  %3808 = vmatprep.subr.mxu0 %v4233_v0 }
 0x585   :  { %3839 = vmatprep.subr.mxu1 %v4233_v0  ;;  %3826 = vmatmul.mubr.msk.f32.vlgmr.msra.gmra.mxu1 %vm181_vm1, %v1858_v55 }
 0x586   :  { %3840 = vmatpush3.msra.mxu1 %v4440_v19  ;;  %3847 = vmatprep.mubr.msk.f32.mxu1 %vm4234_vm0, %v4233_v0 }
 0x587   :  { %3841 = vmatprep.subr.mxu1 %v4233_v0  ;;  %3809 = vmatpush3.msra.mxu0 %v4626_v8 }
 0x588   :  { %3842 = vmatpush3.msra.mxu1 %v4442_v20  ;;  %3810 = vmatprep.subr.mxu0 %v4233_v0 }
 0x589   :  { %3843 = vmatprep.subr.mxu1 %v4233_v0  ;;  %3811 = vmatpush3.msra.mxu0 %v4636_v57 }
 0x58a   :  { %3844 = vmatpush3.msra.mxu1 %v4446_v21  ;;  %3812 = vmatprep.subr.mxu0 %v4233_v0 }
 0x58b   :  { %3845 = vmatprep.subr.mxu1 %v4233_v0  ;;  %3813 = vmatpush3.msra.mxu0 %v4638_v58 }
 0x58c   :  { %3846 = vmatpush3.msra.mxu1 %v4450_v22  ;;  %3828 = vmatprep.subr.mxu0 %v4233_v0 }
 0x58d   :  { %3855 = vmatprep.subr.mxu1 %v4233_v0  ;;  %3848 = vmatmul.mubr.msk.f32.vlgmr.msra.gmra.mxu1 %vm181_vm1, %v1856_v37 }
 0x58e   :  { %3857 = vmatprep.mubr.msk.f32.mxu1 %vm4234_vm0, %v4233_v0 }
 0x625   :  { %v739_v56 = vpop.f32.mrf.mxu1 }
 0x626   :  { %1734 = vrot.lane.b32.xlu0 %v739_v56, %s4242_s7 }
 0x627   :  { %v3745_v2 = vpop.f32.mrf.mxu1 }
 0x629   :  { %v904_v4 = vpop.f32.mrf.mxu1 }
 0x62a   :  { %1738 = vrot.lane.b32.xlu1 %v904_v4, %s4226_s27 }
 0x62b   :  { %v3755_v19 = vpop.f32.mrf.mxu1 }
 0x62d   :  { %v1069_v20 = vpop.f32.mrf.mxu1 }
 0x62e   :  { %1742 = vrot.lane.b32.xlu0 %v1069_v20, %s4243_s0 }
 0x62f   :  { %v3765_v59 = vpop.f32.mrf.mxu1 }
 0x631   :  { %v1234_v21 = vpop.f32.mrf.mxu1 }
 0x632   :  { %1746 = vrot.lane.b32.xlu1 %v1234_v21, %s4244_s13 }
 0x633   :  { %v3775_v60 = vpop.f32.mrf.mxu1 }
 0x635   :  { %v1399_v22 = vpop.f32.mrf.mxu1 }
 0x636   :  { %1750 = vrot.lane.b32.xlu0 %v1399_v22, %s4245_s14 }
 0x637   :  { %v3785_v61 = vpop.f32.mrf.mxu1 }
 0x639   :  { %v1564_v62 = vpop.f32.mrf.mxu1 }
 0x63a   :  { %1754 = vrot.lane.b32.xlu1 %v1564_v62, %s4246_s15 }
 0x63b   :  { %v3795_v63 = vpop.f32.mrf.mxu1 }
 0x63d   :  { %v1729_v9 = vpop.f32.mrf.mxu1 }
 0x63e   :  { %1758 = vrot.lane.b32.xlu0 %v1729_v9, %s4247_s16 }
 0x63f   :  { %v3805_v13 = vpop.f32.mrf.mxu1 }
 0x698   :  { %v1735_v14 = vpop.permute.xlu0 %1734 }
 0x699   :  { %v1761_v23 = vsel %vm415_vm2, %v4524_v10, %v1735_v14  ;;  %v1854_v10 = vld [vmem:[#allocation2 + $0x8] sm:$0xff] }
 0x69c   :  { %v1739_v15 = vpop.permute.xlu1 %1738 }
 0x69d   :  { %v1762_v24 = vsel %vm492_vm4, %v1761_v23, %v1739_v15 }
 0x6a0   :  { %v1743_v16 = vpop.permute.xlu0 %1742 }
 0x6a1   :  { %v1764_v27 = vsel %vm1763_vm5, %v1762_v24, %v1743_v16 }
 0x6a4   :  { %v1747_v17 = vpop.permute.xlu1 %1746 }
 0x6a5   :  { %v1766_v18 = vsel %vm1765_vm6, %v1764_v27, %v1747_v17 }
 0x6a8   :  { %v1751_v26 = vpop.permute.xlu0 %1750 }
 0x6a9   :  { %v1768_v29 = vsel %vm1767_vm7, %v1766_v18, %v1751_v26 }
 0x6ac   :  { %v1755_v28 = vpop.permute.xlu1 %1754 }
 0x6ad   :  { %v1770_v30 = vsel %vm1769_vm8, %v1768_v29, %v1755_v28 }
 0x6b0   :  { %v1759_v31 = vpop.permute.xlu0 %1758 }
 0x6b1   :  { %v1772_v32 = vsel %vm1771_vm9, %v1770_v30, %v1759_v31 }
 0x6b2   :  { %3815 = vmatmul.mubr.msk.f32.vlgmr.msra.gmra.mxu0 %vm181_vm1, %v1772_v32 }
 0x6b3   :  { %3829 = vmatpush3.msra.mxu0 %v4368_v1  ;;  %3836 = vmatprep.mubr.msk.f32.mxu0 %vm4234_vm0, %v4233_v0  ;;  %v1930_v1 = vpop.f32.mrf.mxu1 }
 0x6b4   :  { %3830 = vmatprep.subr.mxu0 %v4233_v0  ;;  %v1931_v33 = vadd.f32 %v4414_v12, %v1930_v1 }
 0x6b5   :  { %3831 = vmatpush3.msra.mxu0 %v4372_v3  ;;  %v3827_v3 = vpop.f32.mrf.mxu1 }
 0x6b6   :  { %3832 = vmatprep.subr.mxu0 %v4233_v0  ;;  %2242 = vrot.lane.b32.xlu0 %v1931_v33, %s4235_s23 }
 0x6b7   :  { %3833 = vmatpush3.msra.mxu0 %v4380_v5  ;;  %v4684_v5 = vld [vmem:[%s4860_s11] ss:$0 sm:$0xff]  ;;  %v2076_v4 = vpop.f32.mrf.mxu1  ;;  %s4248_s11 = smov [#allocation16]  }
 0x6b8   :  { %3834 = vmatprep.subr.mxu0 %v4233_v0  ;;  %s3513_s2 = sshll.u32 %s4248_s11, 4  ;;  %s3514_s2 = int_to_ptr.vmem [resolvable:$true] %s3513_s2 }
 0x6b9   :  { %3835 = vmatpush3.msra.mxu0 %v4388_v7  ;;  %s4191_s1 = scalar_lea.vmem %s3514_s2, 256  ;;  %p4196_p13 = scmp.lt.s32.totalorder %s3514_s2, %s3514_s2 }
 0x6ba   :  { %3837 = vmatmul.mubr.msk.f32.vlgmr.msra.gmra.mxu0 %vm181_vm1, %v1854_v10  ;;  %3850 = vmatprep.subr.mxu0 %v4233_v0  ;;  %p4192_p12 = scmp.ne.s32.totalorder %s3514_s2, %s4191_s1  ;;  %p4197_p0 = scmp.lt.s32.totalorder %s4191_s1, %s4191_s1 }
 0x6bb   :  { %3852 = vmatprep.mubr.msk.f32.mxu0 %vm4234_vm0, %v4233_v0  ;;  %2408 = vrot.lane.b32.xlu0 %v1931_v33, %s4236_s5 }
 0x6bc   :  { %p4198_p1 = por %p4197_p0, %p4196_p13 }
 0x6be   :  { %p4199_p2 = pnand %p4198_p1, %p4192_p12 }
 0x6bf   :  { %2573 = vrot.lane.b32.xlu0 %v1931_v33, %s4237_s9 }
 0x6c3   :  { %2738 = vrot.lane.b32.xlu0 %v1931_v33, %s4238_s24 }
 0x6c7   :  { %2903 = vrot.lane.b32.xlu0 %v1931_v33, %s4239_s25 }
 0x6cb   :  { %3068 = vrot.lane.b32.xlu0 %v1931_v33, %s4240_s28 }
 0x6cf   :  { %3233 = vrot.lane.b32.xlu0 %v1931_v33, %s4241_s6 }
 0x772   :  { %v1848_v7 = vpop.f32.mrf.mxu0 }
 0x773   :  { %v1849_v12 = vadd.f32 %v4684_v5, %v1848_v7 }
 0x774   :  { %v3816_v34 = vpop.f32.mrf.mxu0 }
 0x775   :  { %1852 = vst.msk [vmem:[#allocation16] sm:$0xff] %vm181_vm1, %v1849_v12 }
 0x77a   :  { %v2003_v36 = vpop.f32.mrf.mxu0 }
 0x77b   :  { %v2004_v38 = vadd.f32 %v4409_v11, %v2003_v36  ;;  %v2243_v11 = vpop.permute.xlu0 %2242 }
 0x77c   :  { %v3838_v39 = vpop.f32.mrf.mxu0 }
 0x77d   :  { %2244 = vrot.lane.b32.xlu1 %v2004_v38, %s4235_s23  ;;  %3851 = vmatpush3.xpose.msk.msra.mxu0 %vm415_vm2, %v2004_v38 }
 0x77e   :  { %3860 = vmatprep.subr.mxu0 %v4233_v0 }
 0x77f   :  { %v2409_v40 = vpop.permute.xlu0 %2408 }
 0x780   :  { %3853 = vmatmul.mubr.msk.f32.vlgmr.msra.gmra.mxu0 %vm415_vm2, %v1931_v33 }
 0x781   :  { %2410 = vrot.lane.b32.xlu1 %v2004_v38, %s4236_s5  ;;  %3862 = vmatprep.mubr.msk.f32.mxu0 %vm4234_vm0, %v4233_v0 }
 0x783   :  { %v2574_v42 = vpop.permute.xlu0 %2573 }
 0x785   :  { %2575 = vrot.lane.b32.xlu1 %v2004_v38, %s4237_s9 }
 0x787   :  { %v2739_v45 = vpop.permute.xlu0 %2738 }
 0x789   :  { %2740 = vrot.lane.b32.xlu1 %v2004_v38, %s4238_s24 }
 0x78b   :  { %v2904_v47 = vpop.permute.xlu0 %2903 }
 0x78d   :  { %2905 = vrot.lane.b32.xlu1 %v2004_v38, %s4239_s25 }
 0x78f   :  { %v3069_v49 = vpop.permute.xlu0 %3068 }
 0x791   :  { %3070 = vrot.lane.b32.xlu1 %v2004_v38, %s4240_s28 }
 0x793   :  { %v3234_v51 = vpop.permute.xlu0 %3233 }
 0x795   :  { %3235 = vrot.lane.b32.xlu1 %v2004_v38, %s4241_s6 }
 0x7ef   :  { %v2245_v41 = vpop.permute.xlu1 %2244 }
 0x7f0   :  { %3861 = vmatpush3.xpose.msk.msra.mxu0 %vm415_vm2, %v2245_v41 }
 0x7f1   :  { %3870 = vmatprep.subr.mxu0 %v4233_v0 }
 0x7f3   :  { %v2411_v43 = vpop.permute.xlu1 %2410  ;;  %3863 = vmatmul.mubr.msk.f32.vlgmr.msra.gmra.mxu0 %vm415_vm2, %v2243_v11 }
 0x7f4   :  { %3871 = vmatpush3.xpose.msk.msra.mxu0 %vm415_vm2, %v2411_v43  ;;  %3872 = vmatprep.mubr.msk.f32.mxu0 %vm4234_vm0, %v4233_v0 }
 0x7f5   :  { %3880 = vmatprep.subr.mxu0 %v4233_v0 }
 0x7f7   :  { %v2576_v44 = vpop.permute.xlu1 %2575  ;;  %3873 = vmatmul.mubr.msk.f32.vlgmr.msra.gmra.mxu0 %vm415_vm2, %v2409_v40 }
 0x7f8   :  { %3881 = vmatpush3.xpose.msk.msra.mxu0 %vm415_vm2, %v2576_v44  ;;  %3882 = vmatprep.mubr.msk.f32.mxu0 %vm4234_vm0, %v4233_v0 }
 0x7f9   :  { %3890 = vmatprep.subr.mxu0 %v4233_v0 }
 0x7fb   :  { %v2741_v46 = vpop.permute.xlu1 %2740  ;;  %3883 = vmatmul.mubr.msk.f32.vlgmr.msra.gmra.mxu0 %vm415_vm2, %v2574_v42 }
 0x7fc   :  { %3891 = vmatpush3.xpose.msk.msra.mxu0 %vm415_vm2, %v2741_v46  ;;  %3892 = vmatprep.mubr.msk.f32.mxu0 %vm4234_vm0, %v4233_v0 }
 0x7fd   :  { %3900 = vmatprep.subr.mxu0 %v4233_v0 }
 0x7ff   :  { %v2906_v48 = vpop.permute.xlu1 %2905  ;;  %3893 = vmatmul.mubr.msk.f32.vlgmr.msra.gmra.mxu0 %vm415_vm2, %v2739_v45 }
 0x800   :  { %3901 = vmatpush3.xpose.msk.msra.mxu0 %vm415_vm2, %v2906_v48  ;;  %3902 = vmatprep.mubr.msk.f32.mxu0 %vm4234_vm0, %v4233_v0 }
 0x801   :  { %3910 = vmatprep.subr.mxu0 %v4233_v0 }
 0x803   :  { %v3071_v25 = vpop.permute.xlu1 %3070  ;;  %3903 = vmatmul.mubr.msk.f32.vlgmr.msra.gmra.mxu0 %vm415_vm2, %v2904_v47 }
 0x804   :  { %3911 = vmatpush3.xpose.msk.msra.mxu0 %vm415_vm2, %v3071_v25  ;;  %3912 = vmatprep.mubr.msk.f32.mxu0 %vm4234_vm0, %v4233_v0 }
 0x805   :  { %3920 = vmatprep.subr.mxu0 %v4233_v0 }
 0x807   :  { %v3236_v50 = vpop.permute.xlu1 %3235  ;;  %3913 = vmatmul.mubr.msk.f32.vlgmr.msra.gmra.mxu0 %vm415_vm2, %v3069_v49 }
 0x808   :  { %3921 = vmatpush3.xpose.msk.msra.mxu0 %vm415_vm2, %v3236_v50  ;;  %3922 = vmatprep.mubr.msk.f32.mxu0 %vm4234_vm0, %v4233_v0 }
 0x809   :  { %3930 = vmatprep.subr.mxu0 %v4233_v0 }
 0x80b   :  { %3923 = vmatmul.mubr.msk.f32.vlgmr.msra.gmra.mxu0 %vm415_vm2, %v3234_v51 }
 0x80c   :  { %3931 = vmatpush3.msra.mxu0 %v4624_v6  ;;  %3938 = vmatprep.mubr.msk.f32.mxu0 %vm4234_vm0, %v4233_v0  ;;  %v4749_v6 = vadd.f32 %v4468_v35, %v2076_v4 }
 0x80d   :  { %3932 = vmatprep.subr.mxu0 %v4233_v0 }
 0x80e   :  { %3933 = vmatpush3.msra.mxu0 %v4626_v8  ;;  %v3849_v8 = vpop.f32.mrf.mxu1  ;;  %3856 = vmatpush3.msra.mxu1 %v4749_v6 }
 0x80f   :  { %3934 = vmatprep.subr.mxu0 %v4233_v0  ;;  %3865 = vmatprep.subr.mxu1 %v4233_v0 }
 0x810   :  { %3935 = vmatpush3.msra.mxu0 %v4636_v57 }
 0x811   :  { %3936 = vmatprep.subr.mxu0 %v4233_v0 }
 0x812   :  { %3937 = vmatpush3.msra.mxu0 %v4638_v58 }
 0x840   :  { %v2154_v54 = vpop.f32.mrf.mxu0 }
 0x841   :  { %v2155_v55 = vadd.f32 %v2154_v54, %v2081_v53 }
 0x842   :  { %v3854_v56 = vpop.f32.mrf.mxu0 }
 0x843   :  { %v2158_v2 = vsel %vm492_vm4, %v2155_v55, -inf }
 0x844   :  { %2159 = vmax.xlane.f32.xlu1 %v2158_v2 }
 0x8b3   :  { %v2316_v19 = vpop.f32.mrf.mxu0 }
 0x8b4   :  { %v2317_v20 = vadd.f32 %v2316_v19, %v2081_v53 }
 0x8b5   :  { %v3864_v57 = vpop.f32.mrf.mxu0 }
 0x8b6   :  { %v2320_v58 = vsel %vm492_vm4, %v2317_v20, -inf }
 0x8b7   :  { %2321 = vmax.xlane.f32.xlu0 %v2320_v58  ;;  %v2482_v59 = vpop.f32.mrf.mxu0 }
 0x8b8   :  { %v2483_v21 = vadd.f32 %v2482_v59, %v2081_v53 }
 0x8b9   :  { %v3874_v60 = vpop.f32.mrf.mxu0 }
 0x8ba   :  { %v2486_v22 = vsel %vm492_vm4, %v2483_v21, -inf }
 0x8bb   :  { %2487 = vmax.xlane.f32.xlu0 %v2486_v22  ;;  %v2647_v61 = vpop.f32.mrf.mxu0 }
 0x8bc   :  { %v2648_v35 = vadd.f32 %v2647_v61, %v2081_v53 }
 0x8bd   :  { %v3884_v62 = vpop.f32.mrf.mxu0 }
 0x8be   :  { %v2651_v63 = vsel %vm492_vm4, %v2648_v35, -inf }
 0x8bf   :  { %2652 = vmax.xlane.f32.xlu1 %v2651_v63  ;;  %v2812_v9 = vpop.f32.mrf.mxu0 }
 0x8c0   :  { %v2813_v13 = vadd.f32 %v2812_v9, %v2081_v53 }
 0x8c1   :  { %v3894_v14 = vpop.f32.mrf.mxu0 }
 0x8c2   :  { %v2816_v15 = vsel %vm492_vm4, %v2813_v13, -inf }
 0x8c3   :  { %2817 = vmax.xlane.f32.xlu0 %v2816_v15  ;;  %v2977_v16 = vpop.f32.mrf.mxu0 }
 0x8c4   :  { %v2978_v17 = vadd.f32 %v2977_v16, %v2081_v53 }
 0x8c5   :  { %v3904_v23 = vpop.f32.mrf.mxu0 }
 0x8c6   :  { %v2981_v24 = vsel %vm492_vm4, %v2978_v17, -inf }
 0x8c7   :  { %2982 = vmax.xlane.f32.xlu1 %v2981_v24  ;;  %v3142_v26 = vpop.f32.mrf.mxu0 }
 0x8c8   :  { %v3143_v27 = vadd.f32 %v3142_v26, %v2081_v53 }
 0x8c9   :  { %v3914_v28 = vpop.f32.mrf.mxu0 }
 0x8ca   :  { %v3146_v18 = vsel %vm492_vm4, %v3143_v27, -inf }
 0x8cb   :  { %3147 = vmax.xlane.f32.xlu0 %v3146_v18  ;;  %v3307_v29 = vpop.f32.mrf.mxu0 }
 0x8cc   :  { %v3308_v1 = vadd.f32 %v3307_v29, %v2081_v53 }
 0x8cd   :  { %v3924_v30 = vpop.f32.mrf.mxu0  ;;  %v2160_v31 = vpop.xlane.xlu1 %2159 }
 0x8ce   :  { %v2161_v32 = vsub.f32 %v2155_v55, %v2160_v31  ;;  %v3311_v33 = vsel %vm492_vm4, %v3308_v1, -inf }
 0x8d0   :  { %v2162_v10 = vmul.f32 1.442695, %v2161_v32 }
 0x8d2   :  { %3999 = vpow2.f32 %v2162_v10 }
 0x8d8   :  { %2497 = vrot.lane.b32.xlu1 %v4749_v6, %s4236_s5 }
 0x8df   :  { %v4000_v3 = vpop.eup %3999 }
 0x8e0   :  { %v2164_v7 = vsel %vm492_vm4, %v4000_v3, 0.0 }
 0x8e1   :  { %2332 = vrot.lane.b32.xlu0 %v4749_v6, %s4235_s23 }
 0x8fc   :  { %3312 = vmax.xlane.f32.xlu1 %v3311_v33 }
 0x900   :  { %2165 = vadd.xlane.f32.xlu0 %v2164_v7 }
 0x90d   :  { %2662 = vrot.lane.b32.xlu1 %v4749_v6, %s4237_s9 }
 0x940   :  { %v2322_v12 = vpop.xlane.xlu0 %2321 }
 0x941   :  { %v2323_v34 = vsub.f32 %v2317_v20, %v2322_v12 }
 0x943   :  { %v2324_v36 = vmul.f32 1.442695, %v2323_v34 }
 0x944   :  { %v2488_v38 = vpop.xlane.xlu0 %2487 }
 0x945   :  { %4001 = vpow2.f32 %v2324_v36  ;;  %v2489_v39 = vsub.f32 %v2483_v21, %v2488_v38 }
 0x947   :  { %v2490_v37 = vmul.f32 1.442695, %v2489_v39 }
 0x948   :  { %v2653_v43 = vpop.xlane.xlu1 %2652 }
 0x949   :  { %4003 = vpow2.f32 %v2490_v37  ;;  %v2654_v44 = vsub.f32 %v2648_v35, %v2653_v43 }
 0x94b   :  { %v2655_v48 = vmul.f32 1.442695, %v2654_v44 }
 0x94c   :  { %v2818_v45 = vpop.xlane.xlu0 %2817 }
 0x94d   :  { %v2819_v47 = vsub.f32 %v2813_v13, %v2818_v45  ;;  %4005 = vpow2.f32 %v2655_v48 }
 0x94f   :  { %v2820_v50 = vmul.f32 1.442695, %v2819_v47 }
 0x950   :  { %v2983_v46 = vpop.xlane.xlu1 %2982 }
 0x951   :  { %v2984_v25 = vsub.f32 %v2978_v17, %v2983_v46  ;;  %4007 = vpow2.f32 %v2820_v50 }
 0x952   :  { %v4002_v11 = vpop.eup %4001 }
 0x953   :  { %v2326_v40 = vsel %vm492_vm4, %v4002_v11, 0.0  ;;  %v2985_v51 = vmul.f32 1.442695, %v2984_v25 }
 0x954   :  { %2327 = vadd.xlane.f32.xlu1 %v2326_v40  ;;  %v3148_v49 = vpop.xlane.xlu0 %3147  ;;  %v2498_v54 = vpop.permute.xlu1 %2497 }
 0x955   :  { %v3149_v52 = vsub.f32 %v3143_v27, %v3148_v49  ;;  %4009 = vpow2.f32 %v2985_v51 }
 0x956   :  { %v4768_v41 = vpop.eup %4003 }
 0x957   :  { %v2492_v42 = vsel %vm492_vm4, %v4768_v41, 0.0  ;;  %v3150_v53 = vmul.f32 1.442695, %v3149_v52 }
 0x958   :  { %2493 = vadd.xlane.f32.xlu0 %v2492_v42  ;;  %v2333_v56 = vpop.permute.xlu0 %2332 }
 0x959   :  { %4011 = vpow2.f32 %v3150_v53 }
 0x95a   :  { %v4006_v55 = vpop.eup %4005 }
 0x95b   :  { %v2657_v20 = vsel %vm492_vm4, %v4006_v55, 0.0 }
 0x95e   :  { %v4008_v8 = vpop.eup %4007 }
 0x95f   :  { %v2822_v21 = vsel %vm492_vm4, %v4008_v8, 0.0 }
 0x962   :  { %v4777_v57 = vpop.eup %4009 }
 0x963   :  { %v2987_v59 = vsel %vm492_vm4, %v4777_v57, 0.0 }
 0x965   :  { %2992 = vrot.lane.b32.xlu1 %v4749_v6, %s4239_s25 }
 0x966   :  { %v4782_v60 = vpop.eup %4011 }
 0x967   :  { %v3152_v22 = vsel %vm492_vm4, %v4782_v60, 0.0 }
 0x96e   :  { %2827 = vrot.lane.b32.xlu0 %v4749_v6, %s4238_s24 }
 0x985   :  { %v3313_v2 = vpop.xlane.xlu1 %3312 }
 0x986   :  { %v3314_v4 = vsub.f32 %v3308_v1, %v3313_v2 }
 0x988   :  { %v3315_v19 = vmul.f32 1.442695, %v3314_v4 }
 0x989   :  { %2658 = vadd.xlane.f32.xlu1 %v2657_v20  ;;  %v2166_v58 = vpop.xlane.xlu0 %2165  ;;  %v2663_v9 = vpop.permute.xlu1 %2662 }
 0x98a   :  { %4013 = vpow2.f32 %v3315_v19 }
 0x98b   :  { %4015 = vrcp.f32 %v2166_v58 }
 0x98d   :  { %2988 = vadd.xlane.f32.xlu1 %v2987_v59  ;;  %2823 = vadd.xlane.f32.xlu0 %v2822_v21 }
 0x991   :  { %3153 = vadd.xlane.f32.xlu0 %v3152_v22 }
 0x997   :  { %v4786_v61 = vpop.eup %4013 }
 0x998   :  { %v4016_v35 = vpop.eup %4015  ;;  %v3317_v62 = vsel %vm492_vm4, %v4786_v61, 0.0 }
 0x999   :  { %3318 = vadd.xlane.f32.xlu1 %v3317_v62  ;;  %v2168_v63 = vmul.f32 %v4016_v35, %v4000_v3 }
 0x99b   :  { %3858 = vmatmul.mubr.msk.f32.vlgmr.msra.gmra.mxu1 %vm492_vm4, %v2168_v63 }
 0x99c   :  { %3866 = vmatpush3.msra.mxu1 %v2333_v56  ;;  %3867 = vmatprep.mubr.msk.f32.mxu1 %vm4234_vm0, %v4233_v0 }
 0x99d   :  { %3875 = vmatprep.subr.mxu1 %v4233_v0 }
 0x9a7   :  { %3157 = vrot.lane.b32.xlu0 %v4749_v6, %s4240_s28 }
 0x9aa   :  { %3322 = vrot.lane.b32.xlu1 %v4749_v6, %s4241_s6 }
 0x9dd   :  { %v2328_v13 = vpop.xlane.xlu1 %2327 }
 0x9de   :  { %4017 = vrcp.f32 %v2328_v13 }
 0x9e1   :  { %v2494_v14 = vpop.xlane.xlu0 %2493  ;;  %v2993_v6 = vpop.permute.xlu1 %2992 }
 0x9e2   :  { %4019 = vrcp.f32 %v2494_v14 }
 0x9e5   :  { %v2828_v24 = vpop.permute.xlu0 %2827 }
 0x9eb   :  { %v4018_v15 = vpop.eup %4017 }
 0x9ec   :  { %v2330_v16 = vmul.f32 %v4018_v15, %v4002_v11 }
 0x9ee   :  { %3868 = vmatmul.mubr.msk.f32.vlgmr.msra.gmra.mxu1 %vm492_vm4, %v2330_v16 }
 0x9ef   :  { %v4020_v17 = vpop.eup %4019  ;;  %3876 = vmatpush3.msra.mxu1 %v2498_v54  ;;  %3877 = vmatprep.mubr.msk.f32.mxu1 %vm4234_vm0, %v4233_v0 }
 0x9f0   :  { %3885 = vmatprep.subr.mxu1 %v4233_v0  ;;  %v2496_v23 = vmul.f32 %v4020_v17, %v4768_v41 }
 0x9f2   :  { %3878 = vmatmul.mubr.msk.f32.vlgmr.msra.gmra.mxu1 %vm492_vm4, %v2496_v23 }
 0x9f3   :  { %3886 = vmatpush3.msra.mxu1 %v2663_v9  ;;  %3887 = vmatprep.mubr.msk.f32.mxu1 %vm4234_vm0, %v4233_v0 }
 0x9f4   :  { %3895 = vmatprep.subr.mxu1 %v4233_v0 }
 0xa12   :  { %v2659_v26 = vpop.xlane.xlu1 %2658 }
 0xa13   :  { %4021 = vrcp.f32 %v2659_v26 }
 0xa16   :  { %v2824_v27 = vpop.xlane.xlu0 %2823  ;;  %v2989_v28 = vpop.xlane.xlu1 %2988 }
 0xa17   :  { %4023 = vrcp.f32 %v2824_v27 }
 0xa18   :  { %4025 = vrcp.f32 %v2989_v28 }
 0xa1a   :  { %v3154_v18 = vpop.xlane.xlu0 %3153 }
 0xa1b   :  { %4027 = vrcp.f32 %v3154_v18 }
 0xa1e   :  { %v3158_v7 = vpop.permute.xlu0 %3157 }
 0xa20   :  { %v4022_v29 = vpop.eup %4021 }
 0xa21   :  { %v2661_v30 = vmul.f32 %v4022_v29, %v4006_v55 }
 0xa22   :  { %v3319_v31 = vpop.xlane.xlu1 %3318 }
 0xa23   :  { %4029 = vrcp.f32 %v3319_v31  ;;  %3888 = vmatmul.mubr.msk.f32.vlgmr.msra.gmra.mxu1 %vm492_vm4, %v2661_v30 }
 0xa24   :  { %3896 = vmatpush3.msra.mxu1 %v2828_v24  ;;  %3897 = vmatprep.mubr.msk.f32.mxu1 %vm4234_vm0, %v4233_v0  ;;  %v4024_v32 = vpop.eup %4023 }
 0xa25   :  { %3905 = vmatprep.subr.mxu1 %v4233_v0  ;;  %v2826_v10 = vmul.f32 %v4024_v32, %v4008_v8  ;;  %v4026_v1 = vpop.eup %4025 }
 0xa26   :  { %v2991_v33 = vmul.f32 %v4026_v1, %v4777_v57  ;;  %v3323_v36 = vpop.permute.xlu1 %3322 }
 0xa27   :  { %3898 = vmatmul.mubr.msk.f32.vlgmr.msra.gmra.mxu1 %vm492_vm4, %v2826_v10 }
 0xa28   :  { %3906 = vmatpush3.msra.mxu1 %v2993_v6  ;;  %3907 = vmatprep.mubr.msk.f32.mxu1 %vm4234_vm0, %v4233_v0  ;;  %v4028_v3 = vpop.eup %4027 }
 0xa29   :  { %3915 = vmatprep.subr.mxu1 %v4233_v0  ;;  %v3156_v12 = vmul.f32 %v4028_v3, %v4782_v60 }
 0xa2b   :  { %3908 = vmatmul.mubr.msk.f32.vlgmr.msra.gmra.mxu1 %vm492_vm4, %v2991_v33 }
 0xa2c   :  { %3916 = vmatpush3.msra.mxu1 %v3158_v7  ;;  %3917 = vmatprep.mubr.msk.f32.mxu1 %vm4234_vm0, %v4233_v0 }
 0xa2d   :  { %3925 = vmatprep.subr.mxu1 %v4233_v0 }
 0xa2f   :  { %3918 = vmatmul.mubr.msk.f32.vlgmr.msra.gmra.mxu1 %vm492_vm4, %v3156_v12 }
 0xa30   :  { %v4030_v34 = vpop.eup %4029  ;;  %3926 = vmatpush3.msra.mxu1 %v3323_v36  ;;  %3927 = vmatprep.mubr.msk.f32.mxu1 %vm4234_vm0, %v4233_v0 }
 0xa31   :  { %v3321_v38 = vmul.f32 %v4030_v34, %v4786_v61 }
 0xa33   :  { %3928 = vmatmul.mubr.msk.f32.vlgmr.msra.gmra.mxu1 %vm492_vm4, %v3321_v38 }
 0xa5b   :  { %v2238_v39 = vpop.f32.mrf.mxu1 }
 0xa5d   :  { %v3859_v37 = vpop.f32.mrf.mxu1 }
 0xaae   :  { %v2404_v11 = vpop.f32.mrf.mxu1 }
 0xaaf   :  { %3399 = vrot.lane.b32.xlu0 %v2404_v11, %s4242_s7 }
 0xab0   :  { %v3869_v40 = vpop.f32.mrf.mxu1 }
 0xab2   :  { %v2569_v41 = vpop.f32.mrf.mxu1 }
 0xab3   :  { %3403 = vrot.lane.b32.xlu1 %v2569_v41, %s4226_s27 }
 0xab4   :  { %v3879_v42 = vpop.f32.mrf.mxu1 }
 0xae3   :  { %v2734_v43 = vpop.f32.mrf.mxu1 }
 0xae4   :  { %3407 = vrot.lane.b32.xlu0 %v2734_v43, %s4243_s0 }
 0xae5   :  { %v3889_v44 = vpop.f32.mrf.mxu1 }
 0xae7   :  { %v2899_v45 = vpop.f32.mrf.mxu1 }
 0xae8   :  { %3411 = vrot.lane.b32.xlu1 %v2899_v45, %s4244_s13 }
 0xae9   :  { %v3899_v0 = vpop.f32.mrf.mxu1 }
 0xaeb   :  { %v3064_v46 = vpop.f32.mrf.mxu1 }
 0xaec   :  { %3415 = vrot.lane.b32.xlu0 %v3064_v46, %s4245_s14 }
 0xaed   :  { %v3909_v47 = vpop.f32.mrf.mxu1 }
 0xaef   :  { %v3229_v48 = vpop.f32.mrf.mxu1 }
 0xaf0   :  { %3419 = vrot.lane.b32.xlu1 %v3229_v48, %s4246_s15 }
 0xaf1   :  { %v3919_v25 = vpop.f32.mrf.mxu1 }
 0xaf3   :  { %v3394_v49 = vpop.f32.mrf.mxu1 }
 0xaf4   :  { %3423 = vrot.lane.b32.xlu0 %v3394_v49, %s4247_s16 }
 0xaf5   :  { %v3929_v50 = vpop.f32.mrf.mxu1 }
 0xb21   :  { %v3400_v51 = vpop.permute.xlu0 %3399 }
 0xb22   :  { %v3426_v55 = vsel %vm415_vm2, %v2238_v39, %v3400_v51 }
 0xb25   :  { %v3404_v52 = vpop.permute.xlu1 %3403 }
 0xb26   :  { %v3427_v56 = vsel %vm492_vm4, %v3426_v55, %v3404_v52 }
 0xb56   :  { %v3408_v53 = vpop.permute.xlu0 %3407 }
 0xb57   :  { %v3428_v4 = vsel %vm1763_vm5, %v3427_v56, %v3408_v53 }
 0xb5a   :  { %v3412_v54 = vpop.permute.xlu1 %3411 }
 0xb5b   :  { %v3429_v19 = vsel %vm1765_vm6, %v3428_v4, %v3412_v54 }
 0xb5e   :  { %v3416_v2 = vpop.permute.xlu0 %3415 }
 0xb5f   :  { %v3430_v20 = vsel %vm1767_vm7, %v3429_v19, %v3416_v2 }
 0xb62   :  { %v3420_v8 = vpop.permute.xlu1 %3419 }
 0xb63   :  { %v3431_v57 = vsel %vm1769_vm8, %v3430_v20, %v3420_v8 }
 0xb66   :  { %v3424_v58 = vpop.permute.xlu0 %3423 }
 0xb67   :  { %v3432_v59 = vsel %vm1771_vm9, %v3431_v57, %v3424_v58 }
 0xb68   :  { %3939 = vmatmul.mubr.msk.f32.vlgmr.msra.gmra.mxu0 %vm181_vm1, %v3432_v59 }
 0xc28   :  { %v3502_v21 = vpop.f32.mrf.mxu0 }
 0xc29   :  { %v3503_v60 = vadd.f32 %v4684_v5, %v3502_v21 }
 0xc2a   :  { %v3940_v22 = vpop.f32.mrf.mxu0 }
 0xc2b   :  { %3507 = vst.msk [vmem:[#allocation16 + $0x8] sm:$0xff] %vm181_vm1, %v3503_v60 }
 0xc2c   :  { %4202 = shalt.err (!%p4199_p2)
}
 0xc2d   :  { %3519 = dma.vmem_to_hbm [thread:$0]  %s3514_s2, 256, %s4861_s12, [#allocation4], %s4225_s26, %s4225_s26, %s4226_s27  }
 0xc2e   :  { %4221 = dma.done.wait [#allocation4], 256  }
 0xc2f   :  { %4222 = vsyncadd [#allocation4], 4294967040 }
 0xc30   :  { %3523 = vsyncpa [#allocation3], 1 }
 0xc31   :  { %3524 = vsyncpa [#allocation6], 1 }
 0xc32   :  { %3525 = vsyncpa [#allocation9], 1 }
 0xc33   :  { %3526 = vsyncpa [#allocation12], 1 }
 0xc34   :  { %3527 = vsyncpa [#allocation15], 1 }
 0xc35   :  { %3528 = vsyncpa [#allocation4], 1 }

</bundles_post_ra>
